<compile_context>
chip_gen: v7x
topology: tpu7x:2x2x1
jax: 0.10.0
libtpu: 0.0.40
codegen_flags: <defaults>
</compile_context>

<pallas_src>
import functools

import jax
import jax.numpy as jnp
from jax import lax
from jax.experimental import pallas as pl
from jax.experimental.pallas import tpu as pltpu


def _round_up(x, m):
    return (x + m - 1) // m * m


def _pick_cout_block(cout_p):
    """256 on v6e/v7x (2x256x256 MXU), 128 on v5e (4x128x128 MXU)."""
    kind = ""
    try:
        kind = jax.devices()[0].device_kind.lower()
    except Exception:
        pass
    target = 128 if "v5" in kind else 256
    return target if cout_p % target == 0 else 128


def _dwsep_kernel(x_ref, dw_ref, b1_ref, pw_ref, b2_ref, o_ref, o1_ref,
                  *, stride, th, wo):
    """Grid = (batch*strip, cout_blocks).

    x_ref : (1, th_in, Wp, Cin_p)  bf16 strip (2-row halo), zero-padded NHWC
    dw_ref: (9, Cin_p)             depthwise taps * BN1 scale (row = kh*3+kw), f32
    b1_ref: (1, Cin_p)             folded BN1 bias (incl. conv1 bias), f32
    pw_ref: (Cin_p, CB)            pointwise weights * BN2 scale, this cout block, bf16
    b2_ref: (1, CB)                folded BN2 bias, this cout block, f32
    o_ref : (1, th, Wo, CB)
    o1_ref: (th*Wo, Cin_p)         VMEM scratch: ReLU6(BN1(dwconv)) in bf16
    """
    j = pl.program_id(1)

    # --- depthwise 3x3 + BN1 + ReLU6 : compute once per strip (j == 0) ---
    @pl.when(j == 0)
    def _():
        x = x_ref[0].astype(jnp.float32)            # bf16 strip -> f32 once
        th_in, wp, cin_p = x.shape
        dw = dw_ref[...]                            # loaded once, f32
        rows = stride * (th - 1) + 1

        if stride == 1:
            acc = jnp.zeros((th, wp, cin_p), jnp.float32)
            for kw in range(3):
                # kw offset as a sublane rotation (XLU slot, strip-sized copy);
                # wrapped columns land past the crop so they never matter.
                x_kw = x if kw == 0 else pltpu.roll(x, shift=wp - kw, axis=1)
                for kh in range(3):
                    acc = acc + x_kw[kh:kh + rows] * dw[kh * 3 + kw]
            o1 = acc[:, :wo, :]
        else:
            # Decimate width up-front (3 strided sublane slices) so the 9-tap
            # MAC and the accumulator only touch the Wo columns that survive.
            cols = stride * (wo - 1) + 1
            acc = jnp.zeros((th, wo, cin_p), jnp.float32)
            for kw in range(3):
                x_kw = x[:, kw:kw + cols:stride, :]          # (th_in, wo, cin_p)
                for kh in range(3):
                    acc = acc + x_kw[kh:kh + rows:stride] * dw[kh * 3 + kw]
            o1 = acc

        o1 = jnp.clip(o1 + b1_ref[...], 0.0, 6.0)
        o1_ref[...] = o1.reshape(th * wo, cin_p).astype(jnp.bfloat16)

    # --- pointwise 1x1 (bf16 MXU, f32 accum) + BN2 + ReLU6 for this cout block ---
    o2 = jnp.dot(o1_ref[...], pw_ref[...], preferred_element_type=jnp.float32)
    o2 = jnp.clip(o2 + b2_ref[...], 0.0, 6.0)
    o_ref[0] = o2.reshape(th, wo, -1).astype(o_ref.dtype)


def depthwise_conv2d_block(x_nchw, params, stride=1, eps=1e-5, strip_rows=8):
    """Pallas implementation of DepthwiseConv2d.forward (inference-mode BN)."""
    n, cin, h, w = x_nchw.shape
    cout = params["w2"].shape[0]
    ho = (h + 2 - 3) // stride + 1
    wo = (w + 2 - 3) // stride + 1

    cin_p = _round_up(cin, 128)              # lane-dense channels
    cout_p = _round_up(cout, 128)
    cout_blk = _pick_cout_block(cout_p)      # 256 on v6e/v7x, 128 on v5e
    wp = _round_up(w + 2, 8)                 # sublane-aligned padded width

    # Row-strip tiling: TH output rows per strip, 2-row input halo.
    th = min(strip_rows, ho)
    n_strips = pl.cdiv(ho, th)
    ho_p = n_strips * th
    th_in = (th - 1) * stride + 3
    hp = max((ho_p - 1) * stride + 3, h + 2)

    # Roll-wraparound / column-bounds safety: max padded column ever read is
    # stride*(wo-1) + 2, which must stay inside the wp-wide padded frame.
    assert stride * (wo - 1) + 2 <= wp - 1, (stride, wo, wp)

    # --- layout plumbing (plain JAX glue) ---
    # TODO(synk): in a full MobileNet keep activations NHWC, bf16, channel-padded
    # and strip-major between layers (or fetch the 2-row halo with a manual DMA
    # from a pl.ANY ref) so these transpose/pad/strip HBM round trips leave the
    # hot path entirely.
    x_nhwc = jnp.transpose(x_nchw, (0, 2, 3, 1))
    x_pad = jnp.pad(
        x_nhwc,
        ((0, 0), (1, hp - (h + 1)), (1, wp - (w + 1)), (0, cin_p - cin)),
    ).astype(jnp.bfloat16)                   # bf16 activations: half the DMA bytes
    # strip-major input with overlapping (halo) row windows, folded into batch
    x_strips = jnp.stack(
        [lax.dynamic_slice_in_dim(x_pad, s * th * stride, th_in, axis=1)
         for s in range(n_strips)],
        axis=1,
    ).reshape(n * n_strips, th_in, wp, cin_p)

    # fold BN (inference mode) + conv bias into scale / bias
    s1 = params["g1"] / jnp.sqrt(params["v1"] + eps)
    b1 = params["be1"] + s1 * (params["b1"] - params["m1"])
    s2 = params["g2"] / jnp.sqrt(params["v2"] + eps)
    b2 = params["be2"] + s2 * (params["b2"] - params["m2"])

    # depthwise weight (Cin,1,3,3) -> (9, Cin); fold BN1 scale; pad channels
    dw = jnp.transpose(params["w1"][:, 0, :, :], (1, 2, 0)).reshape(9, cin)
    dw = jnp.pad((dw * s1[None, :]).astype(jnp.float32),
                 ((0, 0), (0, cin_p - cin)))

    # pointwise weight (Cout,Cin,1,1) -> (Cin, Cout); fold BN2 scale; bf16 for MXU
    pw = jnp.transpose(params["w2"][:, :, 0, 0], (1, 0)) * s2[None, :]
    pw = jnp.pad(pw, ((0, cin_p - cin), (0, cout_p - cout))).astype(jnp.bfloat16)

    b1p = jnp.pad(b1, (0, cin_p - cin)).reshape(1, cin_p).astype(jnp.float32)
    b2p = jnp.pad(b2, (0, cout_p - cout)).reshape(1, cout_p).astype(jnp.float32)

    # Advisory cost estimate for XLA's scheduler.
    flops = int(2 * n * ho_p * wo * cin_p * 9 + 2 * n * ho_p * wo * cin_p * cout_p)
    bytes_accessed = int(x_strips.size * 2 + dw.size * 4 + pw.size * 2
                         + b1p.size * 4 + b2p.size * 4
                         + n * ho_p * wo * cout_p * 4)

    out_strips = pl.pallas_call(
        functools.partial(_dwsep_kernel, stride=stride, th=th, wo=wo),
        out_shape=jax.ShapeDtypeStruct((n * n_strips, th, wo, cout_p),
                                       x_nchw.dtype),
        grid_spec=pltpu.PrefetchScalarGridSpec(
            num_scalar_prefetch=0,
            grid=(n * n_strips, cout_p // cout_blk),
            in_specs=[
                pl.BlockSpec((1, th_in, wp, cin_p), lambda t, j: (t, 0, 0, 0)),
                pl.BlockSpec((9, cin_p), lambda t, j: (0, 0)),
                pl.BlockSpec((1, cin_p), lambda t, j: (0, 0)),
                pl.BlockSpec((cin_p, cout_blk), lambda t, j: (0, j)),
                pl.BlockSpec((1, cout_blk), lambda t, j: (0, j)),
            ],
            out_specs=pl.BlockSpec((1, th, wo, cout_blk),
                                   lambda t, j: (t, 0, 0, j)),
            scratch_shapes=[pltpu.VMEM((th * wo, cin_p), jnp.bfloat16)],
        ),
        # batch*strip axis is parallel (megacore / v7x 2-TC sharding even at
        # batch=1); cout axis is arbitrary (carries the o1 scratch across j).
        # With strip-sized blocks the default scoped VMEM limits suffice on
        # v5e/v6e/v7x, so vmem_limit_bytes is left at its default.
        compiler_params=pltpu.CompilerParams(
            dimension_semantics=("parallel", "arbitrary")),
        cost_estimate=pl.CostEstimate(flops=flops, transcendentals=0,
                                      bytes_accessed=bytes_accessed),
    )(x_strips, dw, b1p, pw, b2p)

    # TODO(synk): emit bf16 output instead of f32 when this block feeds the next
    # MobileNet layer (halves writeback bytes); kept f32 here to match the module.
    out_nhwc = out_strips.reshape(n, ho_p, wo, cout_p)[:, :ho, :, :cout]
    return jnp.transpose(out_nhwc, (0, 3, 1, 2))  # back to NCHW


def _reference(x, p, stride=1, eps=1e-5):
    """Pure-JAX reference (NCHW), mirrors the PyTorch module in eval mode."""
    cin = x.shape[1]
    o = lax.conv_general_dilated(
        x, p["w1"], (stride, stride), ((1, 1), (1, 1)),
        dimension_numbers=("NCHW", "OIHW", "NCHW"),
        feature_group_count=cin)
    o = o + p["b1"][None, :, None, None]
    o = (o - p["m1"][None, :, None, None]) / jnp.sqrt(
        p["v1"][None, :, None, None] + eps)
    o = o * p["g1"][None, :, None, None] + p["be1"][None, :, None, None]
    o = jnp.clip(o, 0.0, 6.0)
    o = lax.conv_general_dilated(
        o, p["w2"], (1, 1), ((0, 0), (0, 0)),
        dimension_numbers=("NCHW", "OIHW", "NCHW"))
    o = o + p["b2"][None, :, None, None]
    o = (o - p["m2"][None, :, None, None]) / jnp.sqrt(
        p["v2"][None, :, None, None] + eps)
    o = o * p["g2"][None, :, None, None] + p["be2"][None, :, None, None]
    return jnp.clip(o, 0.0, 6.0)


if __name__ == "__main__":
    # small, deterministic setup
    N, CIN, COUT, H, W, STRIDE = 2, 4, 8, 16, 16, 1
    key = jax.random.PRNGKey(0)
    keys = jax.random.split(key, 12)

    params = {
        # conv1: depthwise 3x3, groups=Cin -> weight (Cin, 1, 3, 3), bias (Cin,)
        "w1": jax.random.normal(keys[0], (CIN, 1, 3, 3), jnp.float32) * 0.3,
        "b1": jax.random.normal(keys[1], (CIN,), jnp.float32) * 0.1,
        # bn1 (inference-mode running stats)
        "g1": 1.0 + 0.1 * jax.random.normal(keys[2], (CIN,), jnp.float32),
        "be1": 0.1 * jax.random.normal(keys[3], (CIN,), jnp.float32),
        "m1": 0.1 * jax.random.normal(keys[4], (CIN,), jnp.float32),
        "v1": 1.0 + 0.1 * jax.random.uniform(keys[5], (CIN,), jnp.float32),
        # conv2: pointwise 1x1 -> weight (Cout, Cin, 1, 1), bias (Cout,)
        "w2": jax.random.normal(keys[6], (COUT, CIN, 1, 1), jnp.float32) * 0.3,
        "b2": jax.random.normal(keys[7], (COUT,), jnp.float32) * 0.1,
        # bn2
        "g2": 1.0 + 0.1 * jax.random.normal(keys[8], (COUT,), jnp.float32),
        "be2": 0.1 * jax.random.normal(keys[9], (COUT,), jnp.float32),
        "m2": 0.1 * jax.random.normal(keys[10], (COUT,), jnp.float32),
        "v2": 1.0 + 0.1 * jax.random.uniform(keys[11], (COUT,), jnp.float32),
    }

    x = jax.random.normal(jax.random.PRNGKey(1), (N, CIN, H, W), jnp.float32)

    out = depthwise_conv2d_block(x, params, stride=STRIDE)
    out = jax.block_until_ready(out)

    ref = _reference(x, params, stride=STRIDE)
    assert out.shape == ref.shape == (N, COUT, H, W)
    # bf16 activations + bf16 MXU operands for the 1x1 conv -> loosened tolerance.
    max_err = float(jnp.max(jnp.abs(out - ref)))
    assert jnp.allclose(out, ref, atol=1e-1, rtol=5e-2), max_err

    print("KERNEL_OK")
</pallas_src>

<mosaic_0001>
module attributes {stable_mosaic.version = 11 : i64} {
  func.func @_dwsep_kernel(%arg0: i32, %arg1: i32, %arg2: memref<1x10x24x128xbf16, #tpu.memory_space<vmem>>, %arg3: memref<9x128xf32, #tpu.memory_space<vmem>>, %arg4: memref<1x128xf32, #tpu.memory_space<vmem>>, %arg5: memref<128x128xbf16, #tpu.memory_space<vmem>>, %arg6: memref<1x128xf32, #tpu.memory_space<vmem>>, %arg7: memref<1x8x16x128xf32, #tpu.memory_space<vmem>>, %arg8: memref<128x128xbf16, #tpu.memory_space<vmem>>) attributes {dimension_semantics = [#tpu.dimension_semantics<parallel>, #tpu.dimension_semantics<arbitrary>], iteration_bounds = array<i64: 4, 1>, scalar_prefetch = 0 : i64, scratch_operands = 1 : i64, tpu.core_type = #tpu.core_type<tc>, window_params = [{transform_indices = @transform_0, window_bounds = array<i64: 1, 10, 24, 128>}, {pipeline_mode = #tpu.pipeline_mode<synchronous>, transform_indices = @transform_1, window_bounds = array<i64: 9, 128>}, {pipeline_mode = #tpu.pipeline_mode<synchronous>, transform_indices = @transform_2, window_bounds = array<i64: 1, 128>}, {transform_indices = @transform_3, window_bounds = array<i64: 128, 128>}, {transform_indices = @transform_4, window_bounds = array<i64: 1, 128>}, {transform_indices = @transform_5, window_bounds = array<i64: 1, 8, 16, 128>}]} {
    %c0_i32 = arith.constant 0 : i32
    %0 = arith.cmpi eq, %arg1, %c0_i32 : i32
    %1 = arith.extui %0 : i1 to i32
    %c0_i32_0 = arith.constant 0 : i32
    %2 = arith.cmpi ne, %1, %c0_i32_0 : i32
    scf.if %2 {
      %c0_12 = arith.constant 0 : index
      %c0_13 = arith.constant 0 : index
      %c0_14 = arith.constant 0 : index
      %c0_15 = arith.constant 0 : index
      %17 = vector.load %arg2[%c0_12, %c0_13, %c0_14, %c0_15] : memref<1x10x24x128xbf16, #tpu.memory_space<vmem>>, vector<1x10x24x128xbf16>
      %18 = vector.shape_cast %17 : vector<1x10x24x128xbf16> to vector<10x24x128xbf16>
      %19 = arith.extf %18 : vector<10x24x128xbf16> to vector<10x24x128xf32>
      %c0_16 = arith.constant 0 : index
      %c0_17 = arith.constant 0 : index
      %20 = vector.load %arg3[%c0_16, %c0_17] : memref<9x128xf32, #tpu.memory_space<vmem>>, vector<9x128xf32>
      %cst_18 = arith.constant 0.000000e+00 : f32
      %21 = vector.broadcast %cst_18 : f32 to vector<8x24x128xf32>
      %22 = vector.extract_strided_slice %19 {offsets = [0, 0, 0], sizes = [8, 24, 128], strides = [1, 1, 1]} : vector<10x24x128xf32> to vector<8x24x128xf32>
      %23 = vector.extract_strided_slice %20 {offsets = [0, 0], sizes = [1, 128], strides = [1, 1]} : vector<9x128xf32> to vector<1x128xf32>
      %24 = vector.shape_cast %23 : vector<1x128xf32> to vector<128xf32>
      %25 = vector.shape_cast %24 : vector<128xf32> to vector<1x1x128xf32>
      %26 = vector.broadcast %25 : vector<1x1x128xf32> to vector<8x24x128xf32>
      %27 = arith.mulf %22, %26 : vector<8x24x128xf32>
      %28 = arith.addf %21, %27 : vector<8x24x128xf32>
      %29 = vector.extract_strided_slice %19 {offsets = [1, 0, 0], sizes = [8, 24, 128], strides = [1, 1, 1]} : vector<10x24x128xf32> to vector<8x24x128xf32>
      %30 = vector.extract_strided_slice %20 {offsets = [3, 0], sizes = [1, 128], strides = [1, 1]} : vector<9x128xf32> to vector<1x128xf32>
      %31 = vector.shape_cast %30 : vector<1x128xf32> to vector<128xf32>
      %32 = vector.shape_cast %31 : vector<128xf32> to vector<1x1x128xf32>
      %33 = vector.broadcast %32 : vector<1x1x128xf32> to vector<8x24x128xf32>
      %34 = arith.mulf %29, %33 : vector<8x24x128xf32>
      %35 = arith.addf %28, %34 : vector<8x24x128xf32>
      %36 = vector.extract_strided_slice %19 {offsets = [2, 0, 0], sizes = [8, 24, 128], strides = [1, 1, 1]} : vector<10x24x128xf32> to vector<8x24x128xf32>
      %37 = vector.extract_strided_slice %20 {offsets = [6, 0], sizes = [1, 128], strides = [1, 1]} : vector<9x128xf32> to vector<1x128xf32>
      %38 = vector.shape_cast %37 : vector<1x128xf32> to vector<128xf32>
      %39 = vector.shape_cast %38 : vector<128xf32> to vector<1x1x128xf32>
      %40 = vector.broadcast %39 : vector<1x1x128xf32> to vector<8x24x128xf32>
      %41 = arith.mulf %36, %40 : vector<8x24x128xf32>
      %42 = arith.addf %35, %41 : vector<8x24x128xf32>
      %c23_i32 = arith.constant 23 : i32
      %43 = tpu.dynamic_rotate %19 by %c23_i32 dim 1 : vector<10x24x128xf32>, i32 -> vector<10x24x128xf32>
      %44 = vector.extract_strided_slice %43 {offsets = [0, 0, 0], sizes = [8, 24, 128], strides = [1, 1, 1]} : vector<10x24x128xf32> to vector<8x24x128xf32>
      %45 = vector.extract_strided_slice %20 {offsets = [1, 0], sizes = [1, 128], strides = [1, 1]} : vector<9x128xf32> to vector<1x128xf32>
      %46 = vector.shape_cast %45 : vector<1x128xf32> to vector<128xf32>
      %47 = vector.shape_cast %46 : vector<128xf32> to vector<1x1x128xf32>
      %48 = vector.broadcast %47 : vector<1x1x128xf32> to vector<8x24x128xf32>
      %49 = arith.mulf %44, %48 : vector<8x24x128xf32>
      %50 = arith.addf %42, %49 : vector<8x24x128xf32>
      %51 = vector.extract_strided_slice %43 {offsets = [1, 0, 0], sizes = [8, 24, 128], strides = [1, 1, 1]} : vector<10x24x128xf32> to vector<8x24x128xf32>
      %52 = vector.extract_strided_slice %20 {offsets = [4, 0], sizes = [1, 128], strides = [1, 1]} : vector<9x128xf32> to vector<1x128xf32>
      %53 = vector.shape_cast %52 : vector<1x128xf32> to vector<128xf32>
      %54 = vector.shape_cast %53 : vector<128xf32> to vector<1x1x128xf32>
      %55 = vector.broadcast %54 : vector<1x1x128xf32> to vector<8x24x128xf32>
      %56 = arith.mulf %51, %55 : vector<8x24x128xf32>
      %57 = arith.addf %50, %56 : vector<8x24x128xf32>
      %58 = vector.extract_strided_slice %43 {offsets = [2, 0, 0], sizes = [8, 24, 128], strides = [1, 1, 1]} : vector<10x24x128xf32> to vector<8x24x128xf32>
      %59 = vector.extract_strided_slice %20 {offsets = [7, 0], sizes = [1, 128], strides = [1, 1]} : vector<9x128xf32> to vector<1x128xf32>
      %60 = vector.shape_cast %59 : vector<1x128xf32> to vector<128xf32>
      %61 = vector.shape_cast %60 : vector<128xf32> to vector<1x1x128xf32>
      %62 = vector.broadcast %61 : vector<1x1x128xf32> to vector<8x24x128xf32>
      %63 = arith.mulf %58, %62 : vector<8x24x128xf32>
      %64 = arith.addf %57, %63 : vector<8x24x128xf32>
      %c22_i32 = arith.constant 22 : i32
      %65 = tpu.dynamic_rotate %19 by %c22_i32 dim 1 : vector<10x24x128xf32>, i32 -> vector<10x24x128xf32>
      %66 = vector.extract_strided_slice %65 {offsets = [0, 0, 0], sizes = [8, 24, 128], strides = [1, 1, 1]} : vector<10x24x128xf32> to vector<8x24x128xf32>
      %67 = vector.extract_strided_slice %20 {offsets = [2, 0], sizes = [1, 128], strides = [1, 1]} : vector<9x128xf32> to vector<1x128xf32>
      %68 = vector.shape_cast %67 : vector<1x128xf32> to vector<128xf32>
      %69 = vector.shape_cast %68 : vector<128xf32> to vector<1x1x128xf32>
      %70 = vector.broadcast %69 : vector<1x1x128xf32> to vector<8x24x128xf32>
      %71 = arith.mulf %66, %70 : vector<8x24x128xf32>
      %72 = arith.addf %64, %71 : vector<8x24x128xf32>
      %73 = vector.extract_strided_slice %65 {offsets = [1, 0, 0], sizes = [8, 24, 128], strides = [1, 1, 1]} : vector<10x24x128xf32> to vector<8x24x128xf32>
      %74 = vector.extract_strided_slice %20 {offsets = [5, 0], sizes = [1, 128], strides = [1, 1]} : vector<9x128xf32> to vector<1x128xf32>
      %75 = vector.shape_cast %74 : vector<1x128xf32> to vector<128xf32>
      %76 = vector.shape_cast %75 : vector<128xf32> to vector<1x1x128xf32>
      %77 = vector.broadcast %76 : vector<1x1x128xf32> to vector<8x24x128xf32>
      %78 = arith.mulf %73, %77 : vector<8x24x128xf32>
      %79 = arith.addf %72, %78 : vector<8x24x128xf32>
      %80 = vector.extract_strided_slice %65 {offsets = [2, 0, 0], sizes = [8, 24, 128], strides = [1, 1, 1]} : vector<10x24x128xf32> to vector<8x24x128xf32>
      %81 = vector.extract_strided_slice %20 {offsets = [8, 0], sizes = [1, 128], strides = [1, 1]} : vector<9x128xf32> to vector<1x128xf32>
      %82 = vector.shape_cast %81 : vector<1x128xf32> to vector<128xf32>
      %83 = vector.shape_cast %82 : vector<128xf32> to vector<1x1x128xf32>
      %84 = vector.broadcast %83 : vector<1x1x128xf32> to vector<8x24x128xf32>
      %85 = arith.mulf %80, %84 : vector<8x24x128xf32>
      %86 = arith.addf %79, %85 : vector<8x24x128xf32>
      %87 = vector.extract_strided_slice %86 {offsets = [0, 0, 0], sizes = [8, 16, 128], strides = [1, 1, 1]} : vector<8x24x128xf32> to vector<8x16x128xf32>
      %c0_19 = arith.constant 0 : index
      %c0_20 = arith.constant 0 : index
      %88 = vector.load %arg4[%c0_19, %c0_20] : memref<1x128xf32, #tpu.memory_space<vmem>>, vector<1x128xf32>
      %89 = vector.shape_cast %88 : vector<1x128xf32> to vector<1x1x128xf32>
      %90 = vector.broadcast %89 : vector<1x1x128xf32> to vector<8x16x128xf32>
      %91 = arith.addf %87, %90 : vector<8x16x128xf32>
      %cst_21 = arith.constant 0.000000e+00 : f32
      %cst_22 = arith.constant 6.000000e+00 : f32
      %92 = vector.broadcast %cst_21 : f32 to vector<8x16x128xf32>
      %93 = arith.maximumf %92, %91 : vector<8x16x128xf32>
      %94 = vector.broadcast %cst_22 : f32 to vector<8x16x128xf32>
      %95 = arith.minimumf %94, %93 : vector<8x16x128xf32>
      %96 = vector.shape_cast %95 : vector<8x16x128xf32> to vector<128x128xf32>
      %97 = arith.truncf %96 : vector<128x128xf32> to vector<128x128xbf16>
      %c0_23 = arith.constant 0 : index
      %c0_24 = arith.constant 0 : index
      %98 = vector.load %arg8[%c0_23, %c0_24] : memref<128x128xbf16, #tpu.memory_space<vmem>>, vector<128x128xbf16>
      tpu.vector_store %arg8[%c0_23, %c0_24], %97 {strides = array<i32>} : memref<128x128xbf16, #tpu.memory_space<vmem>>, vector<128x128xbf16>,
    } else {
    }
    %c0 = arith.constant 0 : index
    %c0_1 = arith.constant 0 : index
    %3 = vector.load %arg8[%c0, %c0_1] : memref<128x128xbf16, #tpu.memory_space<vmem>>, vector<128x128xbf16>
    %c0_2 = arith.constant 0 : index
    %c0_3 = arith.constant 0 : index
    %4 = vector.load %arg5[%c0_2, %c0_3] : memref<128x128xbf16, #tpu.memory_space<vmem>>, vector<128x128xbf16>
    %cst = arith.constant dense<0.000000e+00> : vector<128x128xf32>
    %5 = tpu.matmul %3, %4, %cst {dimension_numbers = #tpu.dot_dimension_numbers<[1], [0], [0], [1], [0, 0, 1, 1], [], []>} : vector<128x128xbf16>, vector<128x128xbf16>, vector<128x128xf32> -> vector<128x128xf32>
    %c0_4 = arith.constant 0 : index
    %c0_5 = arith.constant 0 : index
    %6 = vector.load %arg6[%c0_4, %c0_5] : memref<1x128xf32, #tpu.memory_space<vmem>>, vector<1x128xf32>
    %7 = vector.broadcast %6 : vector<1x128xf32> to vector<128x128xf32>
    %8 = arith.addf %5, %7 : vector<128x128xf32>
    %cst_6 = arith.constant 0.000000e+00 : f32
    %cst_7 = arith.constant 6.000000e+00 : f32
    %9 = vector.broadcast %cst_6 : f32 to vector<128x128xf32>
    %10 = arith.maximumf %9, %8 : vector<128x128xf32>
    %11 = vector.broadcast %cst_7 : f32 to vector<128x128xf32>
    %12 = arith.minimumf %11, %10 : vector<128x128xf32>
    %13 = vector.shape_cast %12 : vector<128x128xf32> to vector<8x16x128xf32>
    %c0_8 = arith.constant 0 : index
    %c0_9 = arith.constant 0 : index
    %c0_10 = arith.constant 0 : index
    %c0_11 = arith.constant 0 : index
    %14 = vector.load %arg7[%c0_8, %c0_9, %c0_10, %c0_11] : memref<1x8x16x128xf32, #tpu.memory_space<vmem>>, vector<1x8x16x128xf32>
    %15 = vector.shape_cast %14 : vector<1x8x16x128xf32> to vector<8x16x128xf32>
    %16 = vector.shape_cast %13 : vector<8x16x128xf32> to vector<1x8x16x128xf32>
    tpu.vector_store %arg7[%c0_8, %c0_9, %c0_10, %c0_11], %16 {strides = array<i32>} : memref<1x8x16x128xf32, #tpu.memory_space<vmem>>, vector<1x8x16x128xf32>,
    return
  }
  func.func @transform_0(%arg0: i32, %arg1: i32) -> (i32, i32, i32, i32) {
    %c0_i32 = arith.constant 0 : i32
    %c0_i32_0 = arith.constant 0 : i32
    %c0_i32_1 = arith.constant 0 : i32
    %c0_i32_2 = arith.constant 0 : i32
    return %arg0, %c0_i32, %c0_i32_0, %c0_i32_1 : i32, i32, i32, i32
  }
  func.func @transform_1(%arg0: i32, %arg1: i32) -> (i32, i32) {
    %c0_i32 = arith.constant 0 : i32
    %c0_i32_0 = arith.constant 0 : i32
    %c0_i32_1 = arith.constant 0 : i32
    return %c0_i32, %c0_i32_0 : i32, i32
  }
  func.func @transform_2(%arg0: i32, %arg1: i32) -> (i32, i32) {
    %c0_i32 = arith.constant 0 : i32
    %c0_i32_0 = arith.constant 0 : i32
    %c0_i32_1 = arith.constant 0 : i32
    return %c0_i32, %c0_i32_0 : i32, i32
  }
  func.func @transform_3(%arg0: i32, %arg1: i32) -> (i32, i32) {
    %c0_i32 = arith.constant 0 : i32
    %c0_i32_0 = arith.constant 0 : i32
    return %c0_i32, %arg1 : i32, i32
  }
  func.func @transform_4(%arg0: i32, %arg1: i32) -> (i32, i32) {
    %c0_i32 = arith.constant 0 : i32
    %c0_i32_0 = arith.constant 0 : i32
    return %c0_i32, %arg1 : i32, i32
  }
  func.func @transform_5(%arg0: i32, %arg1: i32) -> (i32, i32, i32, i32) {
    %c0_i32 = arith.constant 0 : i32
    %c0_i32_0 = arith.constant 0 : i32
    %c0_i32_1 = arith.constant 0 : i32
    return %arg0, %c0_i32, %c0_i32_0, %arg1 : i32, i32, i32, i32
  }
}

</mosaic_0001>

<bundles_post_ra>
// kernel: tpu_custom_call.1
= control target key start
LH: loop header
LB: loop body
LE: loop exit
PB: predicated region body
PF: predicated region fallthrough
CT: control target
= control target key end

     0   :  { %10 = vsyncpa [#allocation4], 0  ;;  %s2643_s0 = inlined_call_operand.hbm [shape: bf16[4,10,24,128], index: 0, kind: input, shape index: {}]   ;;  %s2644_s1 = inlined_call_operand.hbm [shape: f32[9,128], index: 1, kind: input, shape index: {}]   ;;  %s2645_s2 = inlined_call_operand.vmem [shape: f32[1,128], index: 2, kind: input, shape index: {}]   ;;  %s2646_s3 = inlined_call_operand.hbm [shape: bf16[128,128], index: 3, kind: input, shape index: {}]   ;;  %s2647_s4 = inlined_call_operand.vmem [shape: f32[1,128], index: 4, kind: input, shape index: {}]   ;;  %s2648_s5 = inlined_call_operand.hbm [shape: f32[4,8,16,128], index: 5, kind: output, shape index: {}]  }
   0x1   :  { %12 = vsyncpa [#allocation4 + $0x1], 0 }
   0x2   :  { %13 = vsyncpa [#allocation7], 0 }
   0x3   :  { %14 = vsyncpa [#allocation5], 0 }
   0x4   :  { %16 = vsyncpa [#allocation5 + $0x1], 0  ;;  %s1709_s18 = smov 0   ;;  %s1711_s19 = smov 0  }
   0x5   :  { %s1713_s20 = smov 0   ;;  %s1715_s21 = smov 0  }
   0x6   :  { %s1717_s22 = smov 0   ;;  %s1719_s23 = smov 0  }
   0x7 LB: > { %s1228_s24 = sadd.s32 4294967295, %s1667_s23   ;;  %s1229_s25 = sadd.s32 4294967294, %s1667_s23   ;;  %s1667_s23 = sphi %s1719_s23, %s22_s23   ;;  %s1663_s22 = sphi %s1717_s22, %s2722_s22   ;;  %s1659_s21 = sphi %s1715_s21, %s2721_s21   ;;  %s1655_s20 = sphi %s1713_s20, %s2720_s20   ;;  %s1651_s19 = sphi %s1711_s19, %s2719_s19   ;;  %s1647_s18 = sphi %s1709_s18, %s2718_s18  }
   0x8   : > { %p54_p0 = scmp.ne.s32.totalorder %s1651_s19, %s1647_s18  ;;  %p1743_p1 = scmp.eq.s32.totalorder %s1228_s24, 0 }
   0x9   : > { %p1747_p2 = scmp.eq.s32.totalorder %s1228_s24, 3  ;;  %p180_p3 = scmp.eq.s32.totalorder %s1229_s25, 3 }
   0xa   : > { %s2669_s26 = scalar_select %p1743_p1, 1, 0 }
   0xb   : > { %s2670_s27 = scalar_select %p1747_p2, 1, 0 }
   0xc   : > { %p1753_p4 = por %p1743_p1, %p54_p0  ;;  %p1230_p5 = scmp.ge.s32.totalorder %s1667_s23, 1 }
   0xd   : > { %p1758_p6 = por %p180_p3, %p54_p0  ;;  %p187_p7 = scmp.lt.s32.totalorder %s1667_s23, 5 }
   0xe   : > { %s2671_s28 = scalar_select %p1753_p4, 1, 0 }
   0xf   : > { %s2672_s29 = scalar_select %p1758_p6, 1, 0 }
  0x10   : > { %p1763_p8 = pnand %p1230_p5, %p187_p7  ;;  %s1669_s6 = smov [#allocation6]  }
  0x11   : > { %s199_s7 = sshll.u32 %s1669_s6, 4  ;;  %s1670_s9 = smov [#allocation8]   ;;  %s200_s7 = int_to_ptr.vmem [resolvable:$true] %s199_s7 }
  0x12   : > { %s2673_s30 = scalar_select %p1763_p8, 1, 0 }
  0x13   : > { %p1410_p9 = pneg %p1763_p8  ;;  %s217_s10 = sshll.u32 %s1670_s9, 4  ;;  %s1775_s10 = int_to_ptr.vmem [resolvable:$true] %s217_s10 }
  0x14   : > { %s1495_s13 = scalar_lea.hbm %s2644_s1, 256 }
  0x15   : > { %p1771_p10 = pnand %p1410_p9, %p1743_p1  ;;  %p1496_p11 = scmp.ne.s32.totalorder %s2644_s1, %s1495_s13 }
  0x16   : > { %p1502_p3 = scmp.lt.u32.totalorder %s1495_s13, %s2644_s1 }
  0x17   : > { %p1497_p12 = pneg %p1771_p10 }
  0x19   : > { %p1498_p13 = pnand %p1497_p12, %p1496_p11 }
  0x1b   : > { %p1499_p0 = pneg %p1498_p13 }
  0x1d   : > { %p1504_p5 = pnand %p1502_p3, %p1499_p0 }
  0x1f   : > { %1507 = shalt.err (!%p1504_p5)
}
  0x20   : > { %s1508_s24 = scalar_lea.vmem %s200_s7, 256  ;;  %p1516_p1 = scmp.lt.s32.totalorder %s200_s7, %s200_s7 }
  0x21   : > { %p1509_p7 = scmp.ne.s32.totalorder %s200_s7, %s1508_s24  ;;  %p1517_p4 = scmp.lt.s32.totalorder %s1508_s24, %s1508_s24 }
  0x23   : > { %p1511_p9 = pnand %p1509_p7, %p1497_p12  ;;  %p1518_p8 = por %p1517_p4, %p1516_p1 }
  0x25   : > { %p1512_p6 = pneg %p1511_p9 }
  0x27   : > { %p1519_p2 = pnand %p1518_p8, %p1512_p6 }
  0x29   : > { %1522 = shalt.err (!%p1519_p2)
}
  0x2a   : > { %s1671_s25 = smov 128   ;;  %s1672_s6 = smov 8  }
  0x2b   : > { %1413 = dma.hbm_to_vmem [thread:$0]  (!%p1771_p10), %s2644_s1, 256, %s200_s7, [#allocation7], %s1671_s25, %s1671_s25, %s1672_s6  }
  0x2c   : > { %s1523_s14 = scalar_lea.hbm %s2646_s3, 1024 }
  0x2d   : > { %p1524_p11 = scmp.ne.s32.totalorder %s2646_s3, %s1523_s14  ;;  %p1530_p4 = scmp.lt.u32.totalorder %s1523_s14, %s2646_s3 }
  0x2f   : > { %p1526_p1 = pnand %p1524_p11, %p1497_p12 }
  0x31   : > { %p1527_p2 = pneg %p1526_p1 }
  0x33   : > { %p1532_p6 = pnand %p1530_p4, %p1527_p2 }
  0x35   : > { %1535 = shalt.err (!%p1532_p6)
}
  0x36   : > { %s1536_s7 = scalar_lea.vmem %s1775_s10, 1024  ;;  %p1544_p3 = scmp.lt.s32.totalorder %s1775_s10, %s1775_s10 }
  0x37   : > { %p1537_p8 = scmp.ne.s32.totalorder %s1775_s10, %s1536_s7  ;;  %p1545_p5 = scmp.lt.s32.totalorder %s1536_s7, %s1536_s7 }
  0x39   : > { %p1539_p13 = pnand %p1537_p8, %p1497_p12  ;;  %p1546_p7 = por %p1545_p5, %p1544_p3 }
  0x3b   : > { %p1540_p0 = pneg %p1539_p13 }
  0x3d   : > { %p1547_p9 = pnand %p1546_p7, %p1540_p0 }
  0x3f   : > { %1550 = shalt.err (!%p1547_p9)
}
  0x40   : > { %s2653_s25 = smov 64   ;;  %s2654_s6 = smov 4  }
  0x41   : > { %1416 = dma.hbm_to_vmem [thread:$0]  (!%p1771_p10), %s2646_s3, 1024, %s1775_s10, [#allocation7], %s2653_s25, %s2653_s25, %s2654_s6  }
  0x42   : > { %s34_s12 = sadd.s32 1, %s1663_s22  ;;  %s41_s13 = sadd.s32 1, %s1655_s20 }
  0x43   : > { %p36_p12 = scmp.ge.s32.totalorder %s34_s12, 4  ;;  %p48_p11 = scmp.ne.s32.totalorder %s1655_s20, %s1651_s19 }
  0x44   : > { %p49_p1 = scmp.eq.s32.totalorder %s1667_s23, 0  ;;  %p1427_p2 = scmp.lt.s32.totalorder %s1667_s23, 4 }
  0x45   : > { %s2724_s12 = smov (%p36_p12, %s34_s12), 0  ;;  %p2675_p6 = scmp.ne.s32.totalorder %s2670_s27, 0 }
  0x46   : > { %p50_p4 = por %p49_p1, %p48_p11  ;;  %s38_s14 = ssub.s32 %s1663_s22, %s2724_s12 }
  0x47   : > { %p1837_p8 = por %p2675_p6, %p48_p11  ;;  %s237_s15 = sand.u32 1, %s1655_s20  }
  0x48   : > { %p39_p13 = scmp.eq.s32.totalorder %s38_s14, 0  ;;  %s1395_s10 = smul.u32 120, %s237_s15 }
  0x49   : > { %p1844_p10 = pnand %p1427_p2, %p50_p4  ;;  %s1396_s24 = smul.u32 1920, %s1663_s22 }
  0x4a   : > { %s1849_s17 = scalar_select %p39_p13, %s1655_s20, %s41_s13  }
  0x4b   : > { %s241_s7 = scalar_lea.vmem [#allocation3], %s1395_s10  ;;  %s1855_s25 = scalar_lea.hbm %s2643_s0, %s1396_s24 }
  0x4c   : > { %s248_s9 = sshll.u32 %s241_s7, 4  ;;  %s1859_s14 = scalar_lea.sflag [#allocation4], %s237_s15  ;;  %s1857_s9 = int_to_ptr.vmem [resolvable:$true] %s248_s9 }
  0x4d   : > { %s1551_s6 = scalar_lea.hbm %s1855_s25, 1920  ;;  %p1553_p3 = pneg %p1844_p10 }
  0x4e   : > { %p1552_p0 = scmp.ne.s32.totalorder %s1855_s25, %s1551_s6  ;;  %s1556_s24 = scalar_lea.hbm %s2643_s0, 7680 }
  0x4f   : > { %p1557_p9 = scmp.lt.u32.totalorder %s1855_s25, %s2643_s0  ;;  %p1558_p12 = scmp.lt.u32.totalorder %s1556_s24, %s1551_s6 }
  0x50   : > { %p1554_p5 = pnand %p1553_p3, %p1552_p0  ;;  %p1560_p1 = scmp.lt.u32.totalorder %s1551_s6, %s1855_s25 }
  0x51   : > { %p1559_p11 = por %p1558_p12, %p1557_p9 }
  0x52   : > { %p1555_p7 = pneg %p1554_p5 }
  0x53   : > { %p1561_p2 = por %p1560_p1, %p1559_p11 }
  0x55   : > { %p1562_p4 = pnand %p1561_p2, %p1555_p7 }
  0x57   : > { %1565 = shalt.err (!%p1562_p4)
}
  0x58   : > { %s1566_s15 = scalar_lea.vmem %s1857_s9, 1920  ;;  %s1675_s11 = smov [#allocation3]  }
  0x59   : > { %p1567_p6 = scmp.ne.s32.totalorder %s1857_s9, %s1566_s15  ;;  %s1571_s13 = sshll.u32 %s1675_s11, 4  ;;  %s1572_s13 = int_to_ptr.vmem [resolvable:$false] %s1571_s13 }
  0x5a   : > { %s1573_s10 = scalar_lea.vmem %s1572_s13, 3840  ;;  %p1574_p5 = scmp.lt.s32.totalorder %s1857_s9, %s1572_s13 }
  0x5b   : > { %p1569_p13 = pnand %p1567_p6, %p1553_p3  ;;  %p1575_p9 = scmp.lt.s32.totalorder %s1573_s10, %s1566_s15 }
  0x5d   : > { %p1570_p0 = pneg %p1569_p13  ;;  %p1576_p12 = por %p1575_p9, %p1574_p5 }
  0x5f   : > { %p1577_p11 = pnand %p1576_p12, %p1570_p0 }
  0x61   : > { %1580 = shalt.err (!%p1577_p11)
}
  0x62   : > { %s2678_s6 = smov 4   ;;  %s2679_s24 = smov 64  }
  0x63   : > { %1420 = dma.hbm_to_vmem [thread:$0]  (!%p1844_p10), %s1855_s25, 1920, %s1857_s9, %s1859_s14, %s2679_s24, %s2679_s24, %s2678_s6  }
  0x64   : > { %p2680_p3 = scmp.ne.s32.totalorder %s2673_s30, 0 }
  0x66   : > { %260 = sbr.rel (%p2680_p3) target bundleno = 485 (0x1e5), region = 40 }
  0x6d   : > { %s1893_s7 = sand.u32 1, %s1651_s19   ;;  %p2681_p7 = scmp.ne.s32.totalorder %s2671_s28, 0 }
  0x6e   : > { %s1397_s27 = smul.u32 120, %s1893_s7  ;;  %s263_s15 = scalar_lea.sflag [#allocation4], %s1893_s7 }
  0x70   : > { %s1897_s11 = scalar_lea.vmem [#allocation3], %s1397_s27 }
  0x71   : > { %1634 = dma.done.wait (%p2681_p7), %s263_s15, 1920  }
  0x72   : > { %1636 = vsyncadd (%p2681_p7), %s263_s15, 4294965376  ;;  %p2682_p10 = scmp.ne.s32.totalorder %s2669_s26, 0 }
  0x74   : > { %1638 = dma.done.wait (%p2682_p10), [#allocation7], 1280  }
  0x75   : > { %1640 = vsyncadd (%p2682_p10), [#allocation7], 4294966016  ;;  %v374_v0 = vlaneseq  ;;  %v1487_v1 = vld [vmem:[#allocation8] sm:$0xff]   ;;  %v1488_v3 = vld [vmem:[#allocation8 + $0x8] sm:$0xff]   ;;  %s1239_s16 = sshll.u32 %s1893_s7, 7  ;;  %s1256_s14 = sshll.u32 %s1659_s21, 11 }
  0x76   : > { %1347 = vmatprep.subr.bf16.mxu0 %v1487_v1  ;;  %1379 = vmatprep.subr.bf16.mxu1 %v1487_v1  ;;  %v1489_v4 = vld [vmem:[#allocation8 + $0x10] sm:$0xff]   ;;  %v1490_v9 = vld [vmem:[#allocation8 + $0x18] sm:$0xff]   ;;  %v1917_v12 = vld [vmem:[%s1897_s11 + $0x8] sm:$0xff]   ;;  %s2558_s9 = scalar_lea.vmem [#allocation9], %s1239_s16  ;;  %s2590_s24 = scalar_lea.hbm %s2648_s5, %s1256_s14 }
  0x77   : > { %v1907_v2 = vshrl.u32 %v374_v0, 7  ;;  %1348 = vmatpush3.bf16.msra.mxu0 %v1487_v1  ;;  %1387 = vmatpush3.bf16.msra.mxu1 %v1487_v1  ;;  %v1258_v11 = vld [vmem:[%s1897_s11] sm:$0xff]   ;;  %v1920_v13 = vld [vmem:[%s1897_s11 + $0x10] sm:$0xff]   ;;  %v1263_v19 = vunpack.c.l.bf16 %v1917_v12  ;;  %v1931_v20 = vunpack.c.h.bf16 %v1917_v12  ;;  %v1319_v21 = vld [vmem:[%s1897_s11 + $0x18] sm:$0xff]   ;;  %s1112_s13 = sshll.u32 %s2558_s9, 4  ;;  %s1098_s21 = scalar_lea.sflag [#allocation5], %s1893_s7  ;;  %s2592_s13 = int_to_ptr.vmem [resolvable:$true] %s1112_s13 }
  0x78   : > { %1349 = vmatprep.subr.bf16.mxu0 %v1488_v3  ;;  %1380 = vmatprep.subr.bf16.mxu1 %v1488_v3  ;;  %v1925_v17 = vunpack.c.l.bf16 %v1258_v11  ;;  %v1927_v18 = vunpack.c.h.bf16 %v1258_v11  ;;  %v1935_v22 = vld [vmem:[%s1897_s11 + $0x20] sm:$0xff]   ;;  %v1937_v23 = vld [vmem:[#allocation6] sm:$0xff]  ;;  %v1940_v24 = vunpack.c.l.bf16 %v1920_v13  ;;  %v1268_v25 = vunpack.c.h.bf16 %v1920_v13  ;;  %v1492_v49 = vld [vmem:[#allocation8 + $0x28] sm:$0xff]   ;;  %s1581_s27 = scalar_lea.vmem %s2592_s13, 2048  ;;  %s1676_s15 = smov [#allocation9]  }
  0x79   : > { %v376_v5 = vsub.s32 0, %v1907_v2  ;;  %v412_v6 = vsub.s32 3, %v1907_v2  ;;  %v448_v7 = vsub.s32 6, %v1907_v2  ;;  %vm514_vm0 = vcmp.lt.s32.totalorder %v1907_v2, 7  ;;  %v1491_v32 = vld [vmem:[#allocation8 + $0x20] sm:$0xff]   ;;  %p1582_p1 = scmp.ne.s32.totalorder %s2592_s13, %s1581_s27 }
  0x7a   : > { %v537_v8 = vsub.s32 1, %v1907_v2  ;;  %v573_v10 = vsub.s32 4, %v1907_v2  ;;  %v609_v14 = vsub.s32 7, %v1907_v2  ;;  %v696_v15 = vsub.s32 2, %v1907_v2 }
  0x7b   : > { %1350 = vmatpush3.bf16.msra.mxu0 %v1488_v3  ;;  %1388 = vmatpush3.bf16.msra.mxu1 %v1488_v3  ;;  %v732_v16 = vsub.s32 5, %v1907_v2  ;;  %v1943_v26 = vunpack.c.l.bf16 %v1319_v21  ;;  %v1945_v27 = vunpack.c.h.bf16 %v1319_v21  ;;  %v1275_v28 = vunpack.c.l.bf16 %v1935_v22  ;;  %v1493_v3 = vld [vmem:[#allocation8 + $0x30] sm:$0xff]   ;;  %p1583_p2 = pnand %p1582_p1, %p1837_p8 }
  0x7c   : > { %1351 = vmatprep.subr.bf16.mxu0 %v1489_v4  ;;  %1381 = vmatprep.subr.bf16.mxu1 %v1489_v4  ;;  %v1949_v29 = vunpack.c.h.bf16 %v1935_v22  ;;  %v1952_v30 = vrot.slane %v1937_v23, %v376_v5  ;;  %v1955_v31 = vrot.slane %v1937_v23, %v412_v6  ;;  %v1958_v33 = vrot.slane %v1937_v23, %v448_v7 }
  0x7d   : > { %v482_v34 = vrot.slane %v1925_v17, 1  ;;  %v483_v35 = vrot.slane %v1931_v20, 1  ;;  %v484_v36 = vrot.slane %v1943_v26, 1  ;;  %v492_v43 = vrot.slane %v1927_v18, 1  ;;  %p1584_p4 = pneg %p1583_p2 }
  0x7e   : > { %v378_v37 = vmul.f32 %v1925_v17, %v1952_v30  ;;  %v379_v38 = vmul.f32 %v1927_v18, %v1952_v30  ;;  %v414_v39 = vmul.f32 %v1931_v20, %v1955_v31  ;;  %v415_v40 = vmul.f32 %v1940_v24, %v1955_v31 }
  0x7f   : > { %1352 = vmatpush3.bf16.msra.mxu0 %v1489_v4  ;;  %1389 = vmatpush3.bf16.msra.mxu1 %v1489_v4  ;;  %v450_v41 = vmul.f32 %v1943_v26, %v1958_v33  ;;  %v451_v42 = vmul.f32 %v1945_v27, %v1958_v33  ;;  %v493_v44 = vrot.slane %v1940_v24, 1  ;;  %vm673_vm1 = vcmp.lt.s32.totalorder %v1907_v2, 6 }
  0x80   : > { %1353 = vmatprep.subr.bf16.mxu0 %v1490_v9  ;;  %1382 = vmatprep.subr.bf16.mxu1 %v1490_v9  ;;  %v430_v45 = vadd.f32 %v414_v39, %v378_v37  ;;  %v431_v46 = vadd.f32 %v415_v40, %v379_v38  ;;  %v494_v47 = vrot.slane %v1945_v27, 1  ;;  %v502_v48 = vrot.slane %v1263_v19, 1  ;;  %v1494_v37 = vld [vmem:[#allocation8 + $0x38] sm:$0xff]  }
  0x81   : > { %v503_v50 = vrot.slane %v1268_v25, 1  ;;  %v504_v51 = vrot.slane %v1275_v28, 1  ;;  %v525_v52 = vsel %vm514_vm0, %v482_v34, %v492_v43  ;;  %v526_v53 = vsel %vm514_vm0, %v483_v35, %v493_v44 }
  0x82   : > { %v466_v54 = vadd.f32 %v450_v41, %v430_v45  ;;  %v467_v55 = vadd.f32 %v451_v42, %v431_v46  ;;  %v515_v56 = vsel %vm514_vm0, %v492_v43, %v502_v48  ;;  %v527_v57 = vsel %vm514_vm0, %v484_v36, %v494_v47  ;;  %v1322_v42 = vld [vmem:[%s1897_s11 + $0x30] sm:$0xff]   ;;  %v2041_v43 = vld [vmem:[#allocation6 + $0x8] ss:$0 sm:$0xff] }
  0x83   : > { %1354 = vmatpush3.bf16.msra.mxu0 %v1490_v9  ;;  %1390 = vmatpush3.bf16.msra.mxu1 %v1490_v9  ;;  %v516_v58 = vsel %vm514_vm0, %v493_v44, %v503_v50  ;;  %v517_v59 = vsel %vm514_vm0, %v494_v47, %v504_v51  ;;  %v2000_v60 = vrot.slane %v1937_v23, %v537_v8  ;;  %v643_v63 = vrot.slane %v1925_v17, 2 }
  0x84   : > { %1355 = vmatprep.subr.bf16.mxu0 %v1491_v32  ;;  %1383 = vmatprep.subr.bf16.mxu1 %v1491_v32  ;;  %v2003_v61 = vrot.slane %v1937_v23, %v573_v10  ;;  %v2006_v62 = vrot.slane %v1937_v23, %v609_v14  ;;  %v644_v0 = vrot.slane %v1931_v20, 2  ;;  %v645_v1 = vrot.slane %v1943_v26, 2 }
  0x85   : > { %2683 = vst [vmem:[#allocation13_spill] sm:$0xff] %v2000_v60  ;;  %v539_v4 = vmul.f32 %v2000_v60, %v525_v52  ;;  %v540_v5 = vmul.f32 %v2000_v60, %v515_v56  ;;  %v2014_v6 = vmul.f32 %v2000_v60, %v526_v53  ;;  %v653_v7 = vrot.slane %v1927_v18, 2 }
  0x86   : > { %v2018_v8 = vmul.f32 %v2000_v60, %v516_v58  ;;  %v2021_v9 = vmul.f32 %v2000_v60, %v527_v57  ;;  %v2024_v10 = vmul.f32 %v2000_v60, %v517_v59  ;;  %v575_v11 = vmul.f32 %v2003_v61, %v526_v53 }
  0x87   : > { %1356 = vmatpush3.bf16.msra.mxu0 %v1491_v32  ;;  %1391 = vmatpush3.bf16.msra.mxu1 %v1491_v32  ;;  %v555_v14 = vadd.f32 %v539_v4, %v466_v54  ;;  %v556_v17 = vadd.f32 %v540_v5, %v467_v55  ;;  %v576_v21 = vmul.f32 %v2003_v61, %v516_v58  ;;  %v654_v36 = vrot.slane %v1940_v24, 2  ;;  %v2076_v54 = vld [vmem:[%s1897_s11 + $0x38] sm:$0xff]  }
  0x88   : > { %1357 = vmatprep.subr.bf16.mxu0 %v1492_v49  ;;  %1384 = vmatprep.subr.bf16.mxu1 %v1492_v49  ;;  %v2029_v32 = vmul.f32 %v2003_v61, %v527_v57  ;;  %v2032_v18 = vmul.f32 %v2003_v61, %v517_v59  ;;  %v611_v34 = vmul.f32 %v2006_v62, %v527_v57  ;;  %v655_v40 = vrot.slane %v1945_v27, 2 }
  0x89   : > { %v612_v35 = vmul.f32 %v2006_v62, %v517_v59  ;;  %v591_v38 = vadd.f32 %v575_v11, %v555_v14  ;;  %v592_v39 = vadd.f32 %v576_v21, %v556_v17  ;;  %v663_v41 = vrot.slane %v1263_v19, 2 }
  0x8a   : > { %v664_v44 = vrot.slane %v1268_v25, 2  ;;  %v665_v45 = vrot.slane %v1275_v28, 2  ;;  %v684_v46 = vsel %vm673_vm1, %v643_v63, %v653_v7  ;;  %v685_v47 = vsel %vm673_vm1, %v644_v0, %v654_v36  ;;  %v1325_v0 = vld [vmem:[%s1897_s11 + $0x48] sm:$0xff]  }
  0x8b   : > { %1358 = vmatpush3.bf16.msra.mxu0 %v1492_v49  ;;  %1392 = vmatpush3.bf16.msra.mxu1 %v1492_v49  ;;  %v627_v48 = vadd.f32 %v611_v34, %v591_v38  ;;  %v628_v49 = vadd.f32 %v612_v35, %v592_v39  ;;  %v674_v12 = vsel %vm673_vm1, %v653_v7, %v663_v41  ;;  %v2064_v28 = vunpack.c.l.bf16 %v1322_v42  ;;  %v2103_v7 = vld [vmem:[%s1897_s11 + $0x50] sm:$0xff]   ;;  %v2122_v38 = vld [vmem:[%s2645_s2] ss:$0 sm:$0xff] }
  0x8c   : > { %1359 = vmatprep.subr.bf16.mxu0 %v1493_v3  ;;  %1385 = vmatprep.subr.bf16.mxu1 %v1493_v3  ;;  %v686_v19 = vsel %vm673_vm1, %v645_v1, %v655_v40  ;;  %v675_v13 = vsel %vm673_vm1, %v654_v36, %v664_v44  ;;  %v676_v22 = vsel %vm673_vm1, %v655_v40, %v665_v45  ;;  %v2073_v53 = vunpack.c.h.bf16 %v1322_v42 }
  0x8d   : > { %v2062_v25 = vrot.slane %v1937_v23, %v696_v15  ;;  %v2069_v50 = vrot.slane %v1937_v23, %v732_v16  ;;  %v770_v51 = vmul.f32 %v2041_v43, %v686_v19  ;;  %v771_v52 = vmul.f32 %v2041_v43, %v676_v22  ;;  %v2087_v16 = vld [vmem:[%s1897_s11 + $0x40] sm:$0xff]  }
  0x8e   : > { %v2656_v5 = vunpack.c.l.bf16 %v2076_v54  ;;  %v2109_v14 = vunpack.c.h.bf16 %v2076_v54  ;;  %v2112_v17 = vunpack.c.l.bf16 %v2087_v16  ;;  %v2655_v21 = vunpack.c.h.bf16 %v2087_v16 }
  0x8f   : > { %1360 = vmatpush3.bf16.msra.mxu0 %v1493_v3  ;;  %1393 = vmatpush3.bf16.msra.mxu1 %v1493_v3  ;;  %2684 = vst [vmem:[#allocation14_spill] sm:$0xff] %v2062_v25  ;;  %v698_v15 = vmul.f32 %v2062_v25, %v684_v46  ;;  %v699_v55 = vmul.f32 %v2062_v25, %v674_v12  ;;  %v2115_v36 = vunpack.c.l.bf16 %v1325_v0  ;;  %v1299_v39 = vunpack.c.l.bf16 %v2103_v7 }
  0x90   : > { %1361 = vmatprep.subr.bf16.mxu0 %v1494_v37  ;;  %1386 = vmatprep.subr.bf16.mxu1 %v1494_v37  ;;  %v2081_v56 = vmul.f32 %v2062_v25, %v685_v47  ;;  %v2084_v57 = vmul.f32 %v2062_v25, %v675_v13  ;;  %v2090_v23 = vmul.f32 %v2062_v25, %v686_v19  ;;  %v2126_v40 = vunpack.c.h.bf16 %v2103_v7 }
  0x91   : > { %v2093_v58 = vmul.f32 %v2062_v25, %v676_v22  ;;  %v734_v59 = vmul.f32 %v2069_v50, %v685_v47  ;;  %v735_v63 = vmul.f32 %v2069_v50, %v675_v13  ;;  %v714_v1 = vadd.f32 %v698_v15, %v627_v48  ;;  %2687 = vst [vmem:[#allocation17_spill] sm:$0xff] %v2109_v14 }
  0x92   : > { %2685 = vst [vmem:[#allocation15_spill] sm:$0xff] %v2090_v23  ;;  %v715_v3 = vadd.f32 %v699_v55, %v628_v49  ;;  %v2099_v4 = vmul.f32 %v2069_v50, %v686_v19  ;;  %v2106_v11 = vmul.f32 %v2069_v50, %v676_v22  ;;  %2688 = vst [vmem:[#allocation18_spill] sm:$0xff] %v2112_v17  ;;  %v486_v12 = vrot.slane %v2064_v28, 1 }
  0x93   : > { %2686 = vst [vmem:[#allocation16_spill] sm:$0xff] %v2093_v58  ;;  %1362 = vmatpush3.bf16.msra.mxu0 %v1494_v37  ;;  %1394 = vmatpush3.bf16.msra.mxu1 %v1494_v37  ;;  %v750_v34 = vadd.f32 %v734_v59, %v714_v1  ;;  %2689 = vst [vmem:[#allocation19_spill] sm:$0xff] %v2115_v36  ;;  %v2117_v37 = vunpack.c.h.bf16 %v1325_v0  ;;  %v386_v41 = vmul.f32 %v2064_v28, %v1952_v30 }
  0x94   : > { %v751_v35 = vadd.f32 %v735_v63, %v715_v3  ;;  %v387_v42 = vmul.f32 %v2073_v53, %v1952_v30  ;;  %v422_v46 = vmul.f32 %v2109_v14, %v1955_v31  ;;  %v423_v47 = vmul.f32 %v2112_v17, %v1955_v31 }
  0x95   : > { %2690 = vst [vmem:[#allocation20_spill] sm:$0xff] %v2117_v37  ;;  %v786_v44 = vadd.f32 %v770_v51, %v750_v34  ;;  %v458_v48 = vmul.f32 %v2115_v36, %v1958_v33  ;;  %v459_v49 = vmul.f32 %v2117_v37, %v1958_v33  ;;  %v487_v19 = vrot.slane %v2109_v14, 1 }
  0x96   : > { %v787_v45 = vadd.f32 %v771_v52, %v751_v35  ;;  %v438_v51 = vadd.f32 %v422_v46, %v386_v41  ;;  %v439_v52 = vadd.f32 %v423_v47, %v387_v42  ;;  %v488_v15 = vrot.slane %v2115_v36, 1 }
  0x97   : > { %v809_v13 = vadd.f32 %v2122_v38, %v786_v44  ;;  %v496_v55 = vrot.slane %v2073_v53, 1  ;;  %v497_v59 = vrot.slane %v2112_v17, 1  ;;  %v498_v63 = vrot.slane %v2117_v37, 1 }
  0x98   : > { %v810_v22 = vadd.f32 %v2122_v38, %v787_v45  ;;  %v474_v3 = vadd.f32 %v458_v48, %v438_v51  ;;  %v475_v7 = vadd.f32 %v459_v49, %v439_v52  ;;  %v506_v34 = vrot.slane %v2656_v5, 1 }
  0x99   : > { %v825_v0 = vmax.f32 %v809_v13, 0.0  ;;  %v507_v35 = vrot.slane %v2655_v21, 1  ;;  %v508_v41 = vrot.slane %v1299_v39, 1  ;;  %v2154_v42 = vsel %vm514_vm0, %v486_v12, %v496_v55 }
  0x9a   : > { %v826_v1 = vmax.f32 %v810_v22, 0.0  ;;  %v2158_v46 = vsel %vm514_vm0, %v487_v19, %v497_v59  ;;  %v531_v47 = vsel %vm514_vm0, %v488_v15, %v498_v63  ;;  %v2164_v48 = vsel %vm514_vm0, %v496_v55, %v506_v34 }
  0x9b   : > { %v841_v44 = vmin.f32 %v825_v0, 6.0  ;;  %2691 = vst [vmem:[#allocation21_spill] sm:$0xff] %v2158_v46  ;;  %v2168_v49 = vsel %vm514_vm0, %v497_v59, %v507_v35  ;;  %v521_v12 = vsel %vm514_vm0, %v498_v63, %v508_v41  ;;  %v547_v13 = vmul.f32 %v2000_v60, %v2154_v42 }
  0x9c   : > { %v842_v45 = vmin.f32 %v826_v1, 6.0  ;;  %2692 = vst [vmem:[#allocation22_spill] sm:$0xff] %v2168_v49  ;;  %v548_v19 = vmul.f32 %v2000_v60, %v2164_v48  ;;  %v2178_v51 = vmul.f32 %v2000_v60, %v2158_v46  ;;  %v2182_v52 = vmul.f32 %v2000_v60, %v2168_v49 }
  0x9d   : > { %v2185_v15 = vmul.f32 %v2000_v60, %v531_v47  ;;  %v2188_v55 = vmul.f32 %v2000_v60, %v521_v12  ;;  %v563_v59 = vadd.f32 %v547_v13, %v474_v3  ;;  %v583_v63 = vmul.f32 %v2003_v61, %v2158_v46 }
  0x9e   : > { %v857_v22 = vpack.c.bf16 %v842_v45, %v841_v44  ;;  %v564_v0 = vadd.f32 %v548_v19, %v475_v7  ;;  %v584_v1 = vmul.f32 %v2003_v61, %v2168_v49  ;;  %v2195_v34 = vmul.f32 %v2003_v61, %v531_v47 }
  0x9f   : > { %2693 = vst [vmem:[#allocation23_spill] sm:$0xff] %v2185_v15  ;;  %2694 = vst [vmem:[#allocation24_spill] sm:$0xff] %v2188_v55  ;;  %v2198_v35 = vmul.f32 %v2003_v61, %v521_v12  ;;  %v599_v41 = vadd.f32 %v583_v63, %v563_v59  ;;  %v619_v44 = vmul.f32 %v2006_v62, %v531_v47  ;;  %v647_v3 = vrot.slane %v2064_v28, 2 }
  0xa0   : > { %1363 = vmatprep.mubr.bf16.mxu0 %v857_v22  ;;  %v620_v45 = vmul.f32 %v2006_v62, %v521_v12  ;;  %v600_v13 = vadd.f32 %v584_v1, %v564_v0  ;;  %v648_v22 = vrot.slane %v2109_v14, 2  ;;  %v649_v7 = vrot.slane %v2115_v36, 2 }
  0xa1   : > { %v657_v19 = vrot.slane %v2073_v53, 2  ;;  %v635_v21 = vadd.f32 %v619_v44, %v599_v41  ;;  %v658_v5 = vrot.slane %v2112_v17, 2  ;;  %v659_v49 = vrot.slane %v2117_v37, 2 }
  0xa2   : > { %v2695_v59 = vunpack.c.l.bf16 %v2076_v54  ;;  %v636_v63 = vadd.f32 %v620_v45, %v600_v13  ;;  %v2696_v12 = vunpack.c.h.bf16 %v2087_v16  ;;  %v669_v0 = vrot.slane %v1299_v39, 2 }
  0xa3   : > { %v2214_v1 = vsel %vm673_vm1, %v647_v3, %v657_v19  ;;  %v2222_v44 = vsel %vm673_vm1, %v648_v22, %v658_v5  ;;  %v690_v54 = vsel %vm673_vm1, %v649_v7, %v659_v49  ;;  %v1321_v22 = vld [vmem:[%s1897_s11 + $0x28] sm:$0xff]   ;;  %v646_v58 = vrot.slane %v1949_v29, 2 }
  0xa4   : > { %v667_v47 = vrot.slane %v2695_v59, 2  ;;  %v668_v46 = vrot.slane %v2696_v12, 2  ;;  %2697 = vst [vmem:[#allocation25_spill] sm:$0xff] %v2222_v44  ;;  %v706_v16 = vmul.f32 %v2062_v25, %v2214_v1  ;;  %v680_v45 = vsel %vm673_vm1, %v659_v49, %v669_v0 }
  0xa5   : > { %v2238_v13 = vmul.f32 %v2062_v25, %v2222_v44  ;;  %v742_v59 = vmul.f32 %v2069_v50, %v2222_v44  ;;  %v2256_v12 = vmul.f32 %v2069_v50, %v690_v54  ;;  %v2259_v0 = vmul.f32 %v2069_v50, %v680_v45 }
  0xa6   : > { %v2218_v41 = vsel %vm673_vm1, %v657_v19, %v667_v47  ;;  %v2230_v39 = vsel %vm673_vm1, %v658_v5, %v668_v46  ;;  %v2246_v19 = vmul.f32 %v2062_v25, %v690_v54  ;;  %v2249_v5 = vmul.f32 %v2062_v25, %v680_v45 }
  0xa7   : > { %2698 = vst [vmem:[#allocation26_spill] sm:$0xff] %v2230_v39  ;;  %v707_v3 = vmul.f32 %v2062_v25, %v2218_v41  ;;  %v2243_v7 = vmul.f32 %v2062_v25, %v2230_v39  ;;  %v722_v46 = vadd.f32 %v706_v16, %v635_v21  ;;  %v743_v47 = vmul.f32 %v2069_v50, %v2230_v39 }
  0xa8   : > { %2699 = vst [vmem:[#allocation27_spill] sm:$0xff] %v2246_v19  ;;  %2700 = vst [vmem:[#allocation28_spill] sm:$0xff] %v2249_v5  ;;  %v778_v60 = vmul.f32 %v2041_v43, %v690_v54  ;;  %v779_v19 = vmul.f32 %v2041_v43, %v680_v45  ;;  %v2263_v25 = vunpack.c.l.bf16 %v1321_v22  ;;  %v1280_v16 = vunpack.c.h.bf16 %v1321_v22 }
  0xa9   : > { %v723_v49 = vadd.f32 %v707_v3, %v636_v63  ;;  %v758_v21 = vadd.f32 %v742_v59, %v722_v46  ;;  %v380_v3 = vmul.f32 %v1931_v20, %v1952_v30  ;;  %v381_v39 = vmul.f32 %v1940_v24, %v1952_v30 }
  0xaa   : > { %v416_v44 = vmul.f32 %v1943_v26, %v1955_v31  ;;  %v417_v5 = vmul.f32 %v1945_v27, %v1955_v31  ;;  %v452_v54 = vmul.f32 %v1949_v29, %v1958_v33  ;;  %v453_v22 = vmul.f32 %v2263_v25, %v1958_v33 }
  0xab   : > { %v759_v63 = vadd.f32 %v743_v47, %v723_v49  ;;  %v794_v45 = vadd.f32 %v778_v60, %v758_v21  ;;  %v485_v20 = vrot.slane %v1949_v29, 1  ;;  %v495_v24 = vrot.slane %v2263_v25, 1 }
  0xac   : > { %v432_v49 = vadd.f32 %v416_v44, %v380_v3  ;;  %v433_v59 = vadd.f32 %v417_v5, %v381_v39  ;;  %v505_v47 = vrot.slane %v1280_v16, 1  ;;  %v656_v60 = vrot.slane %v2263_v25, 2  ;;  %v1327_v39 = vld [vmem:[%s1897_s11 + $0x58] sm:$0xff]  }
  0xad   : > { %v795_v46 = vadd.f32 %v779_v19, %v759_v63  ;;  %v817_v55 = vadd.f32 %v2122_v38, %v794_v45  ;;  %v2289_v44 = vsel %vm514_vm0, %v485_v20, %v495_v24 }
  0xae   : > { %v468_v21 = vadd.f32 %v452_v54, %v432_v49  ;;  %v469_v19 = vadd.f32 %v453_v22, %v433_v59  ;;  %v2285_v63 = vsel %vm514_vm0, %v495_v24, %v505_v47  ;;  %v613_v45 = vmul.f32 %v2006_v62, %v2289_v44 }
  0xaf   : > { %v818_v15 = vadd.f32 %v2122_v38, %v795_v46  ;;  %v833_v5 = vmax.f32 %v817_v55, 0.0  ;;  %v614_v46 = vmul.f32 %v2006_v62, %v2285_v63  ;;  %v666_v49 = vrot.slane %v1280_v16, 2 }
  0xb0   : > { %v557_v54 = vadd.f32 %v2014_v6, %v468_v21  ;;  %v558_v22 = vadd.f32 %v2018_v8, %v469_v19  ;;  %v2300_v59 = vsel %vm673_vm1, %v646_v58, %v656_v60  ;;  %v2304_v55 = vunpack.c.l.bf16 %v1327_v39 }
  0xb1   : > { %v834_v3 = vmax.f32 %v818_v15, 0.0  ;;  %v849_v20 = vmin.f32 %v833_v5, 6.0  ;;  %v772_v15 = vmul.f32 %v2041_v43, %v2300_v59  ;;  %v2310_v6 = vsel %vm673_vm1, %v656_v60, %v666_v49 }
  0xb2   : > { %v593_v47 = vadd.f32 %v2029_v32, %v557_v54  ;;  %v594_v23 = vadd.f32 %v2032_v18, %v558_v22  ;;  %v1304_v8 = vunpack.c.h.bf16 %v1327_v39  ;;  %v773_v58 = vmul.f32 %v2041_v43, %v2310_v6 }
  0xb3   : > { %v850_v24 = vmin.f32 %v834_v3, 6.0  ;;  %v388_v21 = vmul.f32 %v2109_v14, %v1952_v30  ;;  %v389_v19 = vmul.f32 %v2112_v17, %v1952_v30  ;;  %v424_v32 = vmul.f32 %v2115_v36, %v1955_v31 }
  0xb4   : > { %v629_v5 = vadd.f32 %v613_v45, %v593_v47  ;;  %v630_v3 = vadd.f32 %v614_v46, %v594_v23  ;;  %v425_v18 = vmul.f32 %v2117_v37, %v1955_v31  ;;  %v460_v60 = vmul.f32 %v2126_v40, %v1958_v33 }
  0xb5   : > { %v861_v16 = vpack.c.bf16 %v850_v24, %v849_v20  ;;  %v461_v39 = vmul.f32 %v2304_v55, %v1958_v33  ;;  %v489_v54 = vrot.slane %v2126_v40, 1  ;;  %v499_v22 = vrot.slane %v2304_v55, 1 }
  0xb6   : > { %v716_v45 = vadd.f32 %v2081_v56, %v629_v5  ;;  %v717_v23 = vadd.f32 %v2084_v57, %v630_v3  ;;  %v440_v46 = vadd.f32 %v424_v32, %v388_v21  ;;  %v441_v49 = vadd.f32 %v425_v18, %v389_v19 }
  0xb7   : > { %1371 = vmatprep.mubr.bf16.mxu1 %v861_v16  ;;  %v509_v20 = vrot.slane %v1304_v8, 1  ;;  %v2332_v24 = vsel %vm514_vm0, %v489_v54, %v499_v22  ;;  %v650_v47 = vrot.slane %v2126_v40, 2  ;;  %v660_v16 = vrot.slane %v2304_v55, 2 }
  0xb8   : > { %v752_v17 = vadd.f32 %v2099_v4, %v716_v45  ;;  %v753_v14 = vadd.f32 %v2106_v11, %v717_v23  ;;  %v476_v37 = vadd.f32 %v460_v60, %v440_v46  ;;  %v477_v36 = vadd.f32 %v461_v39, %v441_v49 }
  0xb9   : > { %v2340_v56 = vsel %vm514_vm0, %v499_v22, %v509_v20  ;;  %v621_v57 = vmul.f32 %v2006_v62, %v2332_v24  ;;  %v670_v21 = vrot.slane %v1304_v8, 2  ;;  %v2346_v19 = vsel %vm673_vm1, %v650_v47, %v660_v16 }
  0xba   : > { %v788_v5 = vadd.f32 %v772_v15, %v752_v17  ;;  %v789_v3 = vadd.f32 %v773_v58, %v753_v14  ;;  %v565_v4 = vadd.f32 %v2178_v51, %v476_v37  ;;  %v566_v11 = vadd.f32 %v2182_v52, %v477_v36 }
  0xbb   : > { %v622_v32 = vmul.f32 %v2006_v62, %v2340_v56  ;;  %v2354_v18 = vsel %vm673_vm1, %v660_v16, %v670_v21  ;;  %v780_v8 = vmul.f32 %v2041_v43, %v2346_v19  ;;  %v382_v60 = vmul.f32 %v1943_v26, %v1952_v30 }
  0xbc   : > { %v811_v17 = vadd.f32 %v2122_v38, %v788_v5  ;;  %v812_v14 = vadd.f32 %v2122_v38, %v789_v3  ;;  %v601_v37 = vadd.f32 %v2195_v34, %v565_v4  ;;  %v602_v36 = vadd.f32 %v2198_v35, %v566_v11 }
  0xbd   : > { %v781_v51 = vmul.f32 %v2041_v43, %v2354_v18  ;;  %v383_v52 = vmul.f32 %v1945_v27, %v1952_v30  ;;  %v418_v15 = vmul.f32 %v1949_v29, %v1955_v31  ;;  %v419_v26 = vmul.f32 %v2263_v25, %v1955_v31 }
  0xbe   : > { %v827_v58 = vmax.f32 %v811_v17, 0.0  ;;  %v828_v39 = vmax.f32 %v812_v14, 0.0  ;;  %v637_v54 = vadd.f32 %v621_v57, %v601_v37  ;;  %v638_v22 = vadd.f32 %v622_v32, %v602_v36  ;;  %v1328_v32 = vld [vmem:[%s1897_s11 + $0x60] sm:$0xff]   ;;  %v1329_v14 = vld [vmem:[%s1897_s11 + $0x68] sm:$0xff]  }
  0xbf   : > { %v434_v45 = vadd.f32 %v418_v15, %v382_v60  ;;  %v435_v34 = vadd.f32 %v419_v26, %v383_v52  ;;  %v454_v35 = vmul.f32 %v2064_v28, %v1958_v33  ;;  %v455_v23 = vmul.f32 %v2073_v53, %v1958_v33 }
  0xc0   : > { %v843_v27 = vmin.f32 %v827_v58, 6.0  ;;  %v844_v46 = vmin.f32 %v828_v39, 6.0  ;;  %v724_v49 = vadd.f32 %v2238_v13, %v637_v54  ;;  %v725_v20 = vadd.f32 %v2243_v7, %v638_v22 }
  0xc1   : > { %v470_v47 = vadd.f32 %v454_v35, %v434_v45  ;;  %v471_v16 = vadd.f32 %v455_v23, %v435_v34  ;;  %v579_v57 = vmul.f32 %v2003_v61, %v2289_v44  ;;  %v580_v21 = vmul.f32 %v2003_v61, %v2285_v63  ;;  %v2701_v45 = vld [vmem:[#allocation19_spill] sm:$0xff] }
  0xc2   : > { %v858_v5 = vpack.c.bf16 %v844_v46, %v843_v27  ;;  %v760_v3 = vadd.f32 %v2256_v12, %v724_v49  ;;  %v761_v4 = vadd.f32 %v2259_v0, %v725_v20  ;;  %v615_v11 = vmul.f32 %v2006_v62, %v2154_v42  ;;  %v2702_v27 = vld [vmem:[#allocation20_spill] sm:$0xff]  ;;  %v2703_v20 = vld [vmem:[#allocation15_spill] sm:$0xff] }
  0xc3   : > { %v559_v13 = vadd.f32 %v2021_v9, %v470_v47  ;;  %v560_v7 = vadd.f32 %v2024_v10, %v471_v16  ;;  %v616_v60 = vmul.f32 %v2006_v62, %v2164_v48  ;;  %v738_v17 = vmul.f32 %v2069_v50, %v2300_v59  ;;  %v2704_v16 = vld [vmem:[#allocation16_spill] sm:$0xff] }
  0xc4   : > { %1364 = vmatmul.mubr.bf16.vlgmr.msra.gmra.mrb[0].mxu0 %v858_v5  ;;  %v796_v37 = vadd.f32 %v780_v8, %v760_v3  ;;  %v797_v12 = vadd.f32 %v781_v51, %v761_v4  ;;  %v739_v0 = vmul.f32 %v2069_v50, %v2310_v6  ;;  %v774_v36 = vmul.f32 %v2041_v43, %v2214_v1 }
  0xc5   : > { %v595_v52 = vadd.f32 %v579_v57, %v559_v13  ;;  %v596_v9 = vadd.f32 %v580_v21, %v560_v7  ;;  %v775_v10 = vmul.f32 %v2041_v43, %v2218_v41  ;;  %v2400_v15 = vunpack.c.l.bf16 %v1328_v32 }
  0xc6   : > { %v819_v26 = vadd.f32 %v2122_v38, %v796_v37  ;;  %v820_v58 = vadd.f32 %v2122_v38, %v797_v12  ;;  %v2404_v39 = vunpack.c.h.bf16 %v1328_v32  ;;  %v1311_v8 = vunpack.c.l.bf16 %v1329_v14 }
  0xc7   : > { %v631_v51 = vadd.f32 %v615_v11, %v595_v52  ;;  %v632_v54 = vadd.f32 %v616_v60, %v596_v9  ;;  %v2406_v22 = vunpack.c.h.bf16 %v1329_v14  ;;  %v390_v34 = vmul.f32 %v2701_v45, %v1952_v30 }
  0xc8   : > { %v835_v35 = vmax.f32 %v819_v26, 0.0  ;;  %v836_v23 = vmax.f32 %v820_v58, 0.0  ;;  %v391_v46 = vmul.f32 %v2702_v27, %v1952_v30  ;;  %v426_v49 = vmul.f32 %v2126_v40, %v1955_v31 }
  0xc9   : > { %v718_v47 = vadd.f32 %v2703_v20, %v631_v51  ;;  %v719_v57 = vadd.f32 %v2704_v16, %v632_v54  ;;  %v427_v21 = vmul.f32 %v2304_v55, %v1955_v31  ;;  %v462_v5 = vmul.f32 %v2400_v15, %v1958_v33 }
  0xca   : > { %v851_v3 = vmin.f32 %v835_v35, 6.0  ;;  %v852_v4 = vmin.f32 %v836_v23, 6.0  ;;  %v442_v11 = vadd.f32 %v426_v49, %v390_v34  ;;  %v463_v32 = vmul.f32 %v2404_v39, %v1958_v33  ;;  %v2706_v23 = vld [vmem:[#allocation24_spill] sm:$0xff] }
  0xcb   : > { %v754_v13 = vadd.f32 %v738_v17, %v718_v47  ;;  %v755_v7 = vadd.f32 %v739_v0, %v719_v57  ;;  %v443_v60 = vadd.f32 %v427_v21, %v391_v46  ;;  %v490_v14 = vrot.slane %v2400_v15, 1  ;;  %v2705_v0 = vld [vmem:[#allocation23_spill] sm:$0xff] }
  0xcc   : > { %v862_v37 = vpack.c.bf16 %v852_v4, %v851_v3  ;;  %v478_v12 = vadd.f32 %v462_v5, %v442_v11  ;;  %v500_v52 = vrot.slane %v2404_v39, 1  ;;  %v510_v9 = vrot.slane %v1311_v8, 1 }
  0xcd   : > { %v790_v26 = vadd.f32 %v774_v36, %v754_v13  ;;  %v791_v58 = vadd.f32 %v775_v10, %v755_v7  ;;  %v479_v51 = vadd.f32 %v463_v32, %v443_v60  ;;  %v587_v54 = vmul.f32 %v2003_v61, %v2332_v24 }
  0xce   : > { %1372 = vmatmul.mubr.bf16.vlgmr.msra.gmra.mrb[0].mxu1 %v862_v37  ;;  %v2428_v45 = vsel %vm514_vm0, %v500_v52, %v510_v9  ;;  %v2432_v17 = vsel %vm514_vm0, %v490_v14, %v500_v52  ;;  %v567_v34 = vadd.f32 %v2705_v0, %v478_v12  ;;  %v588_v35 = vmul.f32 %v2003_v61, %v2340_v56  ;;  %v2707_v12 = vld [vmem:[#allocation27_spill] sm:$0xff] }
  0xcf   : > { %v813_v36 = vadd.f32 %v2122_v38, %v790_v26  ;;  %v814_v10 = vadd.f32 %v2122_v38, %v791_v58  ;;  %v568_v27 = vadd.f32 %v2706_v23, %v479_v51  ;;  %v623_v46 = vmul.f32 %v2006_v62, %v2432_v17  ;;  %v2708_v51 = vld [vmem:[#allocation28_spill] sm:$0xff] }
  0xd0   : > { %v603_v49 = vadd.f32 %v587_v54, %v567_v34  ;;  %v624_v20 = vmul.f32 %v2006_v62, %v2428_v45  ;;  %v651_v47 = vrot.slane %v2400_v15, 2  ;;  %v661_v16 = vrot.slane %v2404_v39, 2 }
  0xd1   : > { %v829_v57 = vmax.f32 %v813_v36, 0.0  ;;  %v830_v21 = vmax.f32 %v814_v10, 0.0  ;;  %v604_v5 = vadd.f32 %v588_v35, %v568_v27  ;;  %v671_v3 = vrot.slane %v1311_v8, 2  ;;  %v2709_v10 = vld [vmem:[#allocation17_spill] sm:$0xff]  ;;  %v2710_v27 = vld [vmem:[#allocation18_spill] sm:$0xff] }
  0xd2   : > { %v639_v4 = vadd.f32 %v623_v46, %v603_v49  ;;  %v2448_v11 = vsel %vm673_vm1, %v651_v47, %v661_v16  ;;  %v746_v32 = vmul.f32 %v2069_v50, %v2346_v19  ;;  %v747_v13 = vmul.f32 %v2069_v50, %v2354_v18 }
  0xd3   : > { %v845_v7 = vmin.f32 %v829_v57, 6.0  ;;  %v846_v60 = vmin.f32 %v830_v21, 6.0  ;;  %v640_v14 = vadd.f32 %v624_v20, %v604_v5  ;;  %v2456_v37 = vsel %vm673_vm1, %v661_v16, %v671_v3  ;;  %v2711_v20 = vld [vmem:[#allocation13_spill] sm:$0xff] }
  0xd4   : > { %v726_v8 = vadd.f32 %v2707_v12, %v639_v4  ;;  %v782_v52 = vmul.f32 %v2041_v43, %v2448_v11  ;;  %v783_v9 = vmul.f32 %v2041_v43, %v2456_v37  ;;  %v384_v26 = vmul.f32 %v1949_v29, %v1952_v30  ;;  %v2712_v3 = vld [vmem:[#allocation21_spill] sm:$0xff] }
  0xd5   : > { %v859_v58 = vpack.c.bf16 %v846_v60, %v845_v7  ;;  %v727_v54 = vadd.f32 %v2708_v51, %v640_v14  ;;  %v385_v0 = vmul.f32 %v2263_v25, %v1952_v30  ;;  %v420_v34 = vmul.f32 %v2064_v28, %v1955_v31  ;;  %v1330_v14 = vld [vmem:[%s1897_s11 + $0x70] sm:$0xff]   ;;  %s1585_s11 = sshll.u32 %s1676_s15, 4  ;;  %s1586_s11 = int_to_ptr.vmem [resolvable:$false] %s1585_s11 }
  0xd6   : > { %v762_v35 = vadd.f32 %v746_v32, %v726_v8  ;;  %v421_v36 = vmul.f32 %v2073_v53, %v1955_v31  ;;  %v456_v23 = vmul.f32 %v2709_v10, %v1958_v33  ;;  %v457_v46 = vmul.f32 %v2710_v27, %v1958_v33  ;;  %v2713_v32 = vld [vmem:[#allocation22_spill] sm:$0xff]  ;;  %s1587_s26 = scalar_lea.vmem %s1586_s11, 4096  ;;  %p1588_p6 = scmp.lt.s32.totalorder %s2592_s13, %s1586_s11 }
  0xd7   : > { %1367 = vmatprep.mubr.bf16.mxu0 %v859_v58  ;;  %v763_v29 = vadd.f32 %v747_v13, %v727_v54  ;;  %v436_v49 = vadd.f32 %v420_v34, %v384_v26  ;;  %v545_v25 = vmul.f32 %v2711_v20, %v2289_v44  ;;  %v546_v28 = vmul.f32 %v2711_v20, %v2285_v63  ;;  %v2714_v63 = vld [vmem:[#allocation14_spill] sm:$0xff]  ;;  %v2715_v58 = vld [vmem:[#allocation25_spill] sm:$0xff]  ;;  %p1589_p13 = scmp.lt.s32.totalorder %s1587_s26, %s1581_s27 }
  0xd8   : > { %v798_v47 = vadd.f32 %v782_v52, %v762_v35  ;;  %v437_v16 = vadd.f32 %v421_v36, %v385_v0  ;;  %v581_v53 = vmul.f32 %v2003_v61, %v2154_v42  ;;  %v582_v57 = vmul.f32 %v2003_v61, %v2164_v48  ;;  %v2716_v54 = vld [vmem:[#allocation26_spill] sm:$0xff] }
  0xd9   : > { %v799_v21 = vadd.f32 %v783_v9, %v763_v29  ;;  %v472_v5 = vadd.f32 %v456_v23, %v436_v49  ;;  %v617_v4 = vmul.f32 %v2006_v62, %v2712_v3  ;;  %v618_v13 = vmul.f32 %v2006_v62, %v2713_v32  ;;  %p1590_p0 = por %p1589_p13, %p1588_p6 }
  0xda   : > { %v821_v44 = vadd.f32 %v2122_v38, %v798_v47  ;;  %v473_v7 = vadd.f32 %v457_v46, %v437_v16  ;;  %v704_v60 = vmul.f32 %v2714_v63, %v2300_v59  ;;  %v705_v42 = vmul.f32 %v2714_v63, %v2310_v6 }
  0xdb   : > { %v822_v48 = vadd.f32 %v2122_v38, %v799_v21  ;;  %v561_v12 = vadd.f32 %v545_v25, %v472_v5  ;;  %v740_v8 = vmul.f32 %v2069_v50, %v2214_v1  ;;  %v741_v52 = vmul.f32 %v2069_v50, %v2218_v41  ;;  %p1591_p5 = pnand %p1590_p0, %p1584_p4 }
  0xdc   : > { %v837_v9 = vmax.f32 %v821_v44, 0.0  ;;  %v562_v26 = vadd.f32 %v546_v28, %v473_v7  ;;  %v776_v51 = vmul.f32 %v2041_v43, %v2715_v58  ;;  %v777_v59 = vmul.f32 %v2041_v43, %v2716_v54 }
  0xdd   : > { %v838_v0 = vmax.f32 %v822_v48, 0.0  ;;  %v597_v6 = vadd.f32 %v581_v53, %v561_v12  ;;  %v1315_v34 = vunpack.c.l.bf16 %v1330_v14  ;;  %v1316_v35 = vunpack.c.h.bf16 %v1330_v14 }
  0xde   : > { %v853_v36 = vmin.f32 %v837_v9, 6.0  ;;  %v598_v10 = vadd.f32 %v582_v57, %v562_v26  ;;  %v392_v1 = vmul.f32 %v2126_v40, %v1952_v30  ;;  %v393_v41 = vmul.f32 %v2304_v55, %v1952_v30 }
  0xdf   : > { %v854_v23 = vmin.f32 %v838_v0, 6.0  ;;  %v633_v27 = vadd.f32 %v617_v4, %v597_v6  ;;  %v428_v46 = vmul.f32 %v2400_v15, %v1955_v31  ;;  %v429_v29 = vmul.f32 %v2404_v39, %v1955_v31 }
  0xe0   : > { %v634_v49 = vadd.f32 %v618_v13, %v598_v10  ;;  %v464_v25 = vmul.f32 %v2406_v22, %v1958_v33  ;;  %v465_v28 = vmul.f32 %v1315_v34, %v1958_v33  ;;  %v491_v47 = vrot.slane %v2406_v22, 1 }
  0xe1   : > { %v863_v40 = vpack.c.bf16 %v854_v23, %v853_v36  ;;  %v720_v16 = vadd.f32 %v704_v60, %v633_v27  ;;  %v444_v53 = vadd.f32 %v428_v46, %v392_v1  ;;  %v445_v30 = vadd.f32 %v429_v29, %v393_v41 }
  0xe2   : > { %v721_v55 = vadd.f32 %v705_v42, %v634_v49  ;;  %v501_v57 = vrot.slane %v1315_v34, 1  ;;  %v511_v21 = vrot.slane %v1316_v35, 1  ;;  %v553_v15 = vmul.f32 %v2711_v20, %v2332_v24 }
  0xe3   : > { %1375 = vmatprep.mubr.bf16.mxu1 %v863_v40  ;;  %v756_v31 = vadd.f32 %v740_v8, %v720_v16  ;;  %v480_v39 = vadd.f32 %v464_v25, %v444_v53  ;;  %v481_v5 = vadd.f32 %v465_v28, %v445_v30  ;;  %v554_v3 = vmul.f32 %v2711_v20, %v2340_v56 }
  0xe4   : > { %v757_v33 = vadd.f32 %v741_v52, %v721_v55  ;;  %v524_v4 = vsel %vm514_vm0, %v501_v57, %v511_v21  ;;  %v534_v32 = vsel %vm514_vm0, %v491_v47, %v501_v57  ;;  %v589_v13 = vmul.f32 %v2003_v61, %v2432_v17 }
  0xe5   : > { %v792_v44 = vadd.f32 %v776_v51, %v756_v31  ;;  %v569_v7 = vadd.f32 %v553_v15, %v480_v39  ;;  %v570_v24 = vadd.f32 %v554_v3, %v481_v5  ;;  %v590_v60 = vmul.f32 %v2003_v61, %v2428_v45 }
  0xe6   : > { %v793_v42 = vadd.f32 %v777_v59, %v757_v33  ;;  %v625_v14 = vmul.f32 %v2006_v62, %v534_v32  ;;  %v626_v56 = vmul.f32 %v2006_v62, %v524_v4  ;;  %v652_v20 = vrot.slane %v2406_v22, 2 }
  0xe7   : > { %v815_v48 = vadd.f32 %v2122_v38, %v792_v44  ;;  %v605_v12 = vadd.f32 %v589_v13, %v569_v7  ;;  %v606_v8 = vadd.f32 %v590_v60, %v570_v24  ;;  %v662_v52 = vrot.slane %v1315_v34, 2 }
  0xe8   : > { %v816_v17 = vadd.f32 %v2122_v38, %v793_v42  ;;  %v672_v9 = vrot.slane %v1316_v35, 2  ;;  %v712_v26 = vmul.f32 %v2714_v63, %v2346_v19  ;;  %v713_v61 = vmul.f32 %v2714_v63, %v2354_v18 }
  0xe9   : > { %v831_v45 = vmax.f32 %v815_v48, 0.0  ;;  %v641_v58 = vadd.f32 %v625_v14, %v605_v12  ;;  %v642_v51 = vadd.f32 %v626_v56, %v606_v8  ;;  %v693_v62 = vsel %vm673_vm1, %v652_v20, %v662_v52 }
  0xea   : > { %v832_v22 = vmax.f32 %v816_v17, 0.0  ;;  %v683_v54 = vsel %vm673_vm1, %v662_v52, %v672_v9  ;;  %v748_v59 = vmul.f32 %v2069_v50, %v2448_v11  ;;  %v749_v0 = vmul.f32 %v2069_v50, %v2456_v37 }
  0xeb   : > { %v847_v19 = vmin.f32 %v831_v45, 6.0  ;;  %v728_v6 = vadd.f32 %v712_v26, %v641_v58  ;;  %v729_v34 = vadd.f32 %v713_v61, %v642_v51  ;;  %v784_v18 = vmul.f32 %v2041_v43, %v693_v62 }
  0xec   : > { %v848_v63 = vmin.f32 %v832_v22, 6.0  ;;  %v785_v35 = vmul.f32 %v2041_v43, %v683_v54  ;;  %v2551_v43 = vld [vmem:[%s2647_s4] ss:$0 sm:$0xff] }
  0xed   : > { %v764_v36 = vadd.f32 %v748_v59, %v728_v6  ;;  %v765_v10 = vadd.f32 %v749_v0, %v729_v34 }
  0xee   : > { %v860_v1 = vpack.c.bf16 %v848_v63, %v847_v19 }
  0xef   : > { %v800_v2 = vadd.f32 %v784_v18, %v764_v36  ;;  %v801_v41 = vadd.f32 %v785_v35, %v765_v10 }
  0xf0   : > { %1368 = vmatmul.mubr.bf16.gmra.mrb[4].mxu0 %v860_v1 }
  0xf1   : > { %v823_v11 = vadd.f32 %v2122_v38, %v800_v2  ;;  %v824_v23 = vadd.f32 %v2122_v38, %v801_v41 }
  0xf3   : > { %v839_v50 = vmax.f32 %v823_v11, 0.0  ;;  %v840_v37 = vmax.f32 %v824_v23, 0.0 }
  0xf5   : > { %v855_v27 = vmin.f32 %v839_v50, 6.0  ;;  %v856_v46 = vmin.f32 %v840_v37, 6.0 }
  0xf7   : > { %v864_v29 = vpack.c.bf16 %v856_v46, %v855_v27 }
  0xf9   : > { %1376 = vmatmul.mubr.bf16.gmra.mrb[4].mxu1 %v864_v29 }
 0x197   : > { %v1365_v49 = vpop.f32.mrb[0].mxu0 }
 0x198   : > { %v995_v25 = vadd.f32 %v1365_v49, %v2551_v43  ;;  %v986_v28 = vpop.f32.mrb[1].mxu0 }
 0x199   : > { %v987_v47 = vadd.f32 %v2551_v43, %v986_v28  ;;  %v1366_v40 = vpop.f32.mrb[2].mxu0 }
 0x19a   : > { %v1051_v38 = vmax.f32 %v995_v25, 0.0  ;;  %v998_v16 = vadd.f32 %v1366_v40, %v2551_v43  ;;  %v989_v53 = vpop.f32.mrb[3].mxu0 }
 0x19b   : > { %v1049_v30 = vmax.f32 %v987_v47, 0.0  ;;  %v990_v55 = vadd.f32 %v2551_v43, %v989_v53 }
 0x19c   : > { %v1067_v57 = vmin.f32 %v1051_v38, 6.0  ;;  %v1052_v21 = vmax.f32 %v998_v16, 0.0 }
 0x19d   : > { %v1065_v15 = vmin.f32 %v1049_v30, 6.0  ;;  %v1050_v31 = vmax.f32 %v990_v55, 0.0 }
 0x19e   : > { %1083 = vst [vmem:[%s2558_s9 + $0x10] sm:$0xff] %v1067_v57  ;;  %v1068_v39 = vmin.f32 %v1052_v21, 6.0 }
 0x19f   : > { %1081 = vst [vmem:[%s2558_s9] sm:$0xff] %v1065_v15  ;;  %v1066_v5 = vmin.f32 %v1050_v31, 6.0 }
 0x1a0   : > { %1084 = vst [vmem:[%s2558_s9 + $0x18] sm:$0xff] %v1068_v39 }
 0x1a1   : > { %v1373_v3 = vpop.f32.mrb[0].mxu1  ;;  %1082 = vst [vmem:[%s2558_s9 + $0x8] sm:$0xff] %v1066_v5 }
 0x1a2   : > { %v1027_v33 = vadd.f32 %v1373_v3, %v2551_v43  ;;  %v1018_v4 = vpop.f32.mrb[1].mxu1 }
 0x1a3   : > { %v1019_v32 = vadd.f32 %v2551_v43, %v1018_v4  ;;  %v1374_v13 = vpop.f32.mrb[2].mxu1 }
 0x1a4   : > { %v1059_v44 = vmax.f32 %v1027_v33, 0.0  ;;  %v1030_v7 = vadd.f32 %v1374_v13, %v2551_v43  ;;  %v1021_v24 = vpop.f32.mrb[3].mxu1 }
 0x1a5   : > { %v1057_v60 = vmax.f32 %v1019_v32, 0.0  ;;  %v1022_v42 = vadd.f32 %v2551_v43, %v1021_v24 }
 0x1a6   : > { %v1075_v14 = vmin.f32 %v1059_v44, 6.0  ;;  %v1060_v56 = vmax.f32 %v1030_v7, 0.0 }
 0x1a7   : > { %v1073_v20 = vmin.f32 %v1057_v60, 6.0  ;;  %v1058_v48 = vmax.f32 %v1022_v42, 0.0 }
 0x1a8   : > { %1091 = vst [vmem:[%s2558_s9 + $0x50] sm:$0xff] %v1075_v14  ;;  %v1076_v12 = vmin.f32 %v1060_v56, 6.0 }
 0x1a9   : > { %1089 = vst [vmem:[%s2558_s9 + $0x40] sm:$0xff] %v1073_v20  ;;  %v1074_v8 = vmin.f32 %v1058_v48, 6.0 }
 0x1aa   : > { %1092 = vst [vmem:[%s2558_s9 + $0x58] sm:$0xff] %v1076_v12 }
 0x1ab   : > { %1090 = vst [vmem:[%s2558_s9 + $0x48] sm:$0xff] %v1074_v8 }
 0x1c3   : > { %v1369_v52 = vpop.f32.mrb[4].mxu0 }
 0x1c4   : > { %v1011_v17 = vadd.f32 %v1369_v52, %v2551_v43  ;;  %v1002_v9 = vpop.f32.mrb[5].mxu0 }
 0x1c5   : > { %v1003_v26 = vadd.f32 %v2551_v43, %v1002_v9  ;;  %v1370_v61 = vpop.f32.mrb[6].mxu0 }
 0x1c6   : > { %v1055_v45 = vmax.f32 %v1011_v17, 0.0  ;;  %v1014_v58 = vadd.f32 %v1370_v61, %v2551_v43  ;;  %v1005_v51 = vpop.f32.mrb[7].mxu0 }
 0x1c7   : > { %v1053_v62 = vmax.f32 %v1003_v26, 0.0  ;;  %v1006_v22 = vadd.f32 %v2551_v43, %v1005_v51 }
 0x1c8   : > { %v1071_v54 = vmin.f32 %v1055_v45, 6.0  ;;  %v1056_v59 = vmax.f32 %v1014_v58, 0.0 }
 0x1c9   : > { %v1069_v0 = vmin.f32 %v1053_v62, 6.0  ;;  %v1054_v19 = vmax.f32 %v1006_v22, 0.0 }
 0x1ca   : > { %1087 = vst [vmem:[%s2558_s9 + $0x30] sm:$0xff] %v1071_v54  ;;  %v1072_v6 = vmin.f32 %v1056_v59, 6.0 }
 0x1cb   : > { %1085 = vst [vmem:[%s2558_s9 + $0x20] sm:$0xff] %v1069_v0  ;;  %v1070_v34 = vmin.f32 %v1054_v19, 6.0 }
 0x1cc   : > { %v1377_v18 = vpop.f32.mrb[4].mxu1  ;;  %1088 = vst [vmem:[%s2558_s9 + $0x38] sm:$0xff] %v1072_v6 }
 0x1cd   : > { %v1043_v63 = vadd.f32 %v1377_v18, %v2551_v43  ;;  %v1034_v35 = vpop.f32.mrb[5].mxu1  ;;  %1086 = vst [vmem:[%s2558_s9 + $0x28] sm:$0xff] %v1070_v34 }
 0x1ce   : > { %v1035_v36 = vadd.f32 %v2551_v43, %v1034_v35  ;;  %v1378_v10 = vpop.f32.mrb[6].mxu1 }
 0x1cf   : > { %v1063_v1 = vmax.f32 %v1043_v63, 0.0  ;;  %v1046_v2 = vadd.f32 %v1378_v10, %v2551_v43  ;;  %v1037_v41 = vpop.f32.mrb[7].mxu1 }
 0x1d0   : > { %v1061_v11 = vmax.f32 %v1035_v36, 0.0  ;;  %v1038_v23 = vadd.f32 %v2551_v43, %v1037_v41 }
 0x1d1   : > { %v1079_v50 = vmin.f32 %v1063_v1, 6.0  ;;  %v1064_v37 = vmax.f32 %v1046_v2, 0.0 }
 0x1d2   : > { %v1077_v27 = vmin.f32 %v1061_v11, 6.0  ;;  %v1062_v46 = vmax.f32 %v1038_v23, 0.0 }
 0x1d3   : > { %1095 = vst [vmem:[%s2558_s9 + $0x70] sm:$0xff] %v1079_v50  ;;  %v1080_v29 = vmin.f32 %v1064_v37, 6.0 }
 0x1d4   : > { %1093 = vst [vmem:[%s2558_s9 + $0x60] sm:$0xff] %v1077_v27  ;;  %v1078_v43 = vmin.f32 %v1062_v46, 6.0 }
 0x1d5   : > { %1096 = vst [vmem:[%s2558_s9 + $0x78] sm:$0xff] %v1080_v29 }
 0x1d6   : > { %1094 = vst [vmem:[%s2558_s9 + $0x68] sm:$0xff] %v1078_v43 }
 0x1d7   : > { %1594 = shalt.err (!%p1591_p5)
}
 0x1d8   : > { %s1595_s28 = scalar_lea.hbm %s2590_s24, 2048  ;;  %s1599_s16 = scalar_lea.hbm %s2648_s5, 8192 }
 0x1d9   : > { %p1596_p9 = scmp.ne.s32.totalorder %s2590_s24, %s1595_s28  ;;  %p1600_p3 = scmp.lt.u32.totalorder %s2590_s24, %s2648_s5 }
 0x1da   : > { %p1601_p7 = scmp.lt.u32.totalorder %s1599_s16, %s1595_s28  ;;  %p1603_p1 = scmp.lt.u32.totalorder %s1595_s28, %s2590_s24 }
 0x1db   : > { %p1597_p12 = pnand %p1596_p9, %p1837_p8 }
 0x1dc   : > { %p1602_p10 = por %p1601_p7, %p1600_p3 }
 0x1dd   : > { %p1598_p11 = pneg %p1597_p12 }
 0x1de   : > { %p1604_p2 = por %p1603_p1, %p1602_p10 }
 0x1e0   : > { %p1605_p4 = pnand %p1604_p2, %p1598_p11 }
 0x1e2   : > { %1608 = shalt.err (!%p1605_p4)
}
 0x1e3   : > { %s1677_s10 = smov 128   ;;  %s1678_s6 = smov 8  }
 0x1e4   : > { %1408 = dma.vmem_to_hbm [thread:$0]  (%p1837_p8), %s2592_s13, 2048, %s2590_s24, %s1098_s21, %s1677_s10, %s1677_s10, %s1678_s6  }
 0x1e5 PF: > { %p1430_p6 = scmp.ge.s32.totalorder %s1667_s23, 2  ;;  %s1127_s27 = sand.u32 1, %s1647_s18  }
 0x1e6   : > { %p2717_p13 = scmp.ne.s32.totalorder %s2672_s29, 0  ;;  %s1128_s15 = scalar_lea.sflag [#allocation5], %s1127_s27 }
 0x1e8   : > { %p1422_p0 = pnand %p1430_p6, %p2717_p13 }
 0x1ea   : > { %1642 = dma.done.wait (!%p1422_p0), %s1128_s15, 2048  }
 0x1eb   : > { %1644 = vsyncadd (!%p1422_p0), %s1128_s15, 4294965248  ;;  %s22_s23 = sadd.s32 1, %s1667_s23   ;;  %s2718_s18 = smov %s1651_s19 }
 0x1ec   : > { %p19_p5 = scmp.ge.s32.totalorder %s22_s23, 6   ;;  %s2719_s19 = smov %s1655_s20 }
 0x1ed   : > { %s2720_s20 = smov %s1849_s17  ;;  %s2721_s21 = smov %s1663_s22 }
 0x1ee   : > { %s2722_s22 = smov %s2724_s12  ;;  %21 = sbr.rel (!%p19_p5) target bundleno = 7 (0x7), region = 101 }
 0x1f5   :  { %1133 = vsyncpa [#allocation4], 1 }
 0x1f6   :  { %1135 = vsyncpa [#allocation4 + $0x1], 1 }
 0x1f7   :  { %1136 = vsyncpa [#allocation7], 1 }
 0x1f8   :  { %1137 = vsyncpa [#allocation5], 1 }
 0x1f9   :  { %1139 = vsyncpa [#allocation5 + $0x1], 1 }

</bundles_post_ra>
